<compile_context>
chip_gen: v5e
topology: v5e:2x2
jax: 0.10.0
libtpu: 0.0.40
codegen_flags: <defaults>
</compile_context>

<pallas_src>
import random

import jax
import jax.numpy as jnp
from jax import lax
from jax.experimental import pallas as pl
from jax.experimental.pallas import tpu as pltpu

# ---- model sizes (small, TPU-friendly) -------------------------------------
S, T, B = 8, 6, 8           # src len, trg len, batch
E, H, A = 16, 32, 32        # emb dim, hidden dim (enc == dec), attn dim
SRC_VOCAB, TRG_VOCAB = 50, 40
V_PAD = 128                 # lane-dense padded logits width
NEG_INF = -1e9


# ---- shared GRU gate math (PyTorch nn.GRU gate semantics) --------------------
def _gru_gates(gi, gh, h):
    hd = h.shape[-1]
    r = jax.nn.sigmoid(gi[:, :hd] + gh[:, :hd])
    z = jax.nn.sigmoid(gi[:, hd:2 * hd] + gh[:, hd:2 * hd])
    n = jnp.tanh(gi[:, 2 * hd:] + r * gh[:, 2 * hd:])
    return (1.0 - z) * n + z * h


# ---- encoder kernel: single invocation, unrolled recurrence ------------------
def encoder_kernel(x_ref, wih_ref, whh_ref, bih_ref, bhh_ref, wfc_ref, bfc_ref,
                   wae_ref, ba_ref, enc_ref, encA_ref, h0_ref):
    wih = wih_ref[...]
    whh = whh_ref[...]
    bih = bih_ref[...]
    bhh = bhh_ref[...]
    wae = wae_ref[...]
    ba = ba_ref[...]

    h = jnp.zeros((B, H), jnp.float32)
    for t in range(S):                       # static unroll (S = 8)
        xt = x_ref[t]                        # (B, E)
        gi = jnp.dot(xt, wih, preferred_element_type=jnp.float32) + bih
        gh = jnp.dot(h, whh, preferred_element_type=jnp.float32) + bhh
        h = _gru_gates(gi, gh, h)
        enc_ref[t] = h                                                        # (B, H)
        # hoisted (loop-invariant for the decoder) attention projection + bias
        encA_ref[t] = jnp.dot(h, wae, preferred_element_type=jnp.float32) + ba  # (B, A)

    # decoder initial hidden = tanh(fc(h_last)) -- computed once
    h0_ref[...] = jnp.tanh(
        jnp.dot(h, wfc_ref[...], preferred_element_type=jnp.float32) + bfc_ref[...])


def run_encoder(src_emb, p):
    vmem = pl.BlockSpec(memory_space=pltpu.MemorySpace.VMEM)
    return pl.pallas_call(
        encoder_kernel,
        out_shape=(jax.ShapeDtypeStruct((S, B, H), jnp.float32),   # encoder outputs
                   jax.ShapeDtypeStruct((S, B, A), jnp.float32),   # enc @ W_e + b_a
                   jax.ShapeDtypeStruct((B, H), jnp.float32)),     # dec_h0
        in_specs=[vmem] * 9,
        out_specs=(vmem, vmem, vmem),
    )(src_emb, p["enc_wih"], p["enc_whh"], p["enc_bih"], p["enc_bhh"],
      p["enc_wfc"], p["enc_bfc"], p["att_we"], p["att_b"])


# ---- fused decoder kernel: grid over target time, state carried in VMEM ------
def decoder_kernel(flags_ref,                       # SMEM scalar prefetch: (T-1,) int32
                   tf_ref, h0_ref, enc_ref, encA_ref, wah_ref, v_ref,
                   wih_e_ref, wih_c_ref, whh_ref, bih_ref, bhh_ref,
                   wout_h_ref, wout_c_ref, wout_e_ref, bout_ref, demb_ref,
                   logits_ref, h_scr, pemb_scr):
    i = pl.program_id(0)

    @pl.when(i == 0)
    def _():
        h_scr[...] = h0_ref[...]
        pemb_scr[...] = jnp.zeros_like(pemb_scr)

    # input embedding: teacher-forced token (precomputed embedding) or previous argmax
    use_tf = (flags_ref[i] > 0).astype(jnp.float32)
    emb = use_tf * tf_ref[0] + (1.0 - use_tf) * pemb_scr[...]                 # (B, E)

    h = h_scr[...]                                                            # (B, H)

    # additive attention, scores laid out (B, S) => lane-axis softmax
    hid_part = jnp.dot(h, wah_ref[...], preferred_element_type=jnp.float32)   # (B, A)
    energy = jnp.tanh(encA_ref[...] + hid_part[:, None, :])                   # (B, S, A)
    scores = jnp.sum(energy * v_ref[...][None, :, :], axis=-1)                # (B, S)
    scores = scores - jnp.max(scores, axis=-1, keepdims=True)
    e = jnp.exp(scores)
    attn = e * pl.reciprocal(jnp.sum(e, axis=-1, keepdims=True), approx=True)  # (B, S)
    context = jnp.sum(attn[:, :, None] * enc_ref[...], axis=1)                # (B, H)

    # GRU cell on [emb ; context] via pre-split W_ih (no lane concat)
    gi = (jnp.dot(emb, wih_e_ref[...], preferred_element_type=jnp.float32)
          + jnp.dot(context, wih_c_ref[...], preferred_element_type=jnp.float32)
          + bih_ref[...])
    gh = jnp.dot(h, whh_ref[...], preferred_element_type=jnp.float32) + bhh_ref[...]
    h_new = _gru_gates(gi, gh, h)
    h_scr[...] = h_new

    # output projection on [h_new ; context ; emb] via pre-split, lane-padded W_out
    logits = (jnp.dot(h_new, wout_h_ref[...], preferred_element_type=jnp.float32)
              + jnp.dot(context, wout_c_ref[...], preferred_element_type=jnp.float32)
              + jnp.dot(emb, wout_e_ref[...], preferred_element_type=jnp.float32)
              + bout_ref[...])                                                # (B, V_PAD)
    logits_ref[0] = logits

    # greedy next-token embedding for the non-teacher-forced path (in-kernel argmax)
    col = lax.broadcasted_iota(jnp.int32, logits.shape, 1).astype(jnp.float32)
    amax = jnp.max(logits, axis=-1, keepdims=True)
    idx = jnp.min(jnp.where(logits == amax, col, float(V_PAD)),
                  axis=-1, keepdims=True)                                     # first max
    onehot = (col == idx).astype(jnp.float32)                                 # (B, V_PAD)
    pemb_scr[...] = jnp.dot(onehot, demb_ref[...], preferred_element_type=jnp.float32)


def run_decoder(flags, tf_emb, h0, enc_bsh, encA_bsa, dp):
    n_steps = tf_emb.shape[0]
    const = lambda shape: pl.BlockSpec(shape, lambda i, f, _s=shape: (0,) * len(_s))
    return pl.pallas_call(
        decoder_kernel,
        out_shape=jax.ShapeDtypeStruct((n_steps, B, V_PAD), jnp.float32),
        grid_spec=pltpu.PrefetchScalarGridSpec(
            num_scalar_prefetch=1,
            grid=(n_steps,),
            in_specs=[
                pl.BlockSpec((1, B, E), lambda i, f: (i, 0, 0)),   # teacher-forced embs
                const((B, H)),                                     # dec_h0
                const((B, S, H)),                                  # encoder outputs
                const((B, S, A)),                                  # enc @ W_e + b_a
                const((H, A)),                                     # att_wh
                const((1, A)),                                     # att_v
                const((E, 3 * H)),                                 # W_ih (emb part)
                const((H, 3 * H)),                                 # W_ih (ctx part)
                const((H, 3 * H)),                                 # W_hh
                const((1, 3 * H)),                                 # b_ih
                const((1, 3 * H)),                                 # b_hh
                const((H, V_PAD)),                                 # W_out (h part)
                const((H, V_PAD)),                                 # W_out (ctx part)
                const((E, V_PAD)),                                 # W_out (emb part)
                const((1, V_PAD)),                                 # b_out (padded -inf)
                const((V_PAD, E)),                                 # dec embedding table
            ],
            out_specs=pl.BlockSpec((1, B, V_PAD), lambda i, f: (i, 0, 0)),
            scratch_shapes=[pltpu.VMEM((B, H), jnp.float32),       # hidden carry
                            pltpu.VMEM((B, E), jnp.float32)],      # argmax embedding carry
        ),
        compiler_params=pltpu.CompilerParams(dimension_semantics=("arbitrary",)),
    )(flags, tf_emb, h0, enc_bsh, encA_bsa,
      dp["att_wh"], dp["att_v"],
      dp["wih_e"], dp["wih_c"], dp["whh"], dp["bih"], dp["bhh"],
      dp["wout_h"], dp["wout_c"], dp["wout_e"], dp["bout"], dp["demb_pad"])


# ---- host-side weight split / lane padding ----------------------------------
def prepare_decoder_params(p):
    wih = p["dec_wih"]                                      # (E+H, 3H)
    wout = p["dec_wout"]                                    # (2H+E, V)
    pad = V_PAD - TRG_VOCAB
    wout_pad = jnp.pad(wout, ((0, 0), (0, pad)))
    bout_pad = jnp.pad(p["dec_bout"], ((0, 0), (0, pad)), constant_values=NEG_INF)
    demb_pad = jnp.pad(p["dec_emb"], ((0, V_PAD - TRG_VOCAB), (0, 0)))
    return {
        "att_wh": p["att_wh"], "att_v": p["att_v"],
        "wih_e": wih[:E], "wih_c": wih[E:],
        "whh": p["dec_whh"], "bih": p["dec_bih"], "bhh": p["dec_bhh"],
        "wout_h": wout_pad[:H], "wout_c": wout_pad[H:2 * H], "wout_e": wout_pad[2 * H:],
        "bout": bout_pad, "demb_pad": demb_pad,
    }


# ---- full attn_Seq2Seq.forward ----------------------------------------------
@jax.jit
def _forward_device(src, trg, flags, params):
    n_steps = trg.shape[0] - 1
    src_emb = params["enc_emb"][src]                         # (S, B, E) gather glue
    enc_sbh, encA_sba, h0 = run_encoder(src_emb, params)
    enc_bsh = jnp.transpose(enc_sbh, (1, 0, 2))              # (B, S, H)
    encA_bsa = jnp.transpose(encA_sba, (1, 0, 2))            # (B, S, A)

    dp = prepare_decoder_params(params)
    tf_emb = params["dec_emb"][trg[:n_steps]]                # (T-1, B, E)
    logits_pad = run_decoder(flags, tf_emb, h0, enc_bsh, encA_bsa, dp)
    logits = logits_pad[:, :, :TRG_VOCAB]                    # drop lane padding
    zero_row = jnp.zeros((1, trg.shape[1], TRG_VOCAB), jnp.float32)
    return jnp.concatenate([zero_row, logits], axis=0)       # outputs[0] stays zero


def attn_seq2seq_forward(src, trg, params, teacher_forcing_ratio=0.5):
    # deterministic host-side teacher-forcing coin flips, precomputed up front
    random.seed(0)
    n_steps = trg.shape[0] - 1
    coins = [random.random() < teacher_forcing_ratio for _ in range(n_steps)]
    # step 0 always consumes trg[0]; the coin flipped at step i gates step i+1's input
    flags = jnp.array([1] + [int(c) for c in coins[:n_steps - 1]], dtype=jnp.int32)
    return _forward_device(src, trg, flags, params)


# ---- deterministic parameter init -------------------------------------------
def init_params(key):
    ks = jax.random.split(key, 16)
    w = lambda k, shp, s=0.1: (s * jax.random.normal(k, shp)).astype(jnp.float32)
    return {
        "enc_emb": w(ks[0], (SRC_VOCAB, E)),
        "enc_wih": w(ks[1], (E, 3 * H)),
        "enc_whh": w(ks[2], (H, 3 * H)),
        "enc_bih": w(ks[3], (1, 3 * H)),
        "enc_bhh": w(ks[4], (1, 3 * H)),
        "enc_wfc": w(ks[5], (H, H)),
        "enc_bfc": w(ks[6], (1, H)),
        "dec_emb": w(ks[7], (TRG_VOCAB, E)),
        "att_wh": w(ks[8], (H, A)),
        "att_we": w(ks[9], (H, A)),
        "att_b": w(ks[10], (1, A)),
        "att_v": w(ks[11], (1, A)),
        "dec_wih": w(ks[12], (E + H, 3 * H)),
        "dec_whh": w(ks[13], (H, 3 * H)),
        "dec_bih": w(ks[14], (1, 3 * H)),
        "dec_bhh": w(ks[15], (1, 3 * H)),
        "dec_wout": w(jax.random.fold_in(key, 100), (2 * H + E, TRG_VOCAB)),
        "dec_bout": w(jax.random.fold_in(key, 101), (1, TRG_VOCAB)),
    }


if __name__ == "__main__":
    key = jax.random.PRNGKey(0)
    pkey, skey, tkey = jax.random.split(key, 3)
    params = init_params(pkey)
    src = jax.random.randint(skey, (S, B), 0, SRC_VOCAB, dtype=jnp.int32)
    trg = jax.random.randint(tkey, (T, B), 0, TRG_VOCAB, dtype=jnp.int32)

    out = attn_seq2seq_forward(src, trg, params, teacher_forcing_ratio=0.5)
    out = jax.block_until_ready(out)
    assert out.shape == (T, B, TRG_VOCAB)
    assert bool(jnp.all(out[0] == 0.0))
    print("KERNEL_OK")
</pallas_src>

<mosaic_0001>
module attributes {stable_mosaic.version = 11 : i64} {
  func.func @encoder_kernel(%arg0: memref<8x8x16xf32, #tpu.memory_space<vmem>>, %arg1: memref<16x96xf32, #tpu.memory_space<vmem>>, %arg2: memref<32x96xf32, #tpu.memory_space<vmem>>, %arg3: memref<1x96xf32, #tpu.memory_space<vmem>>, %arg4: memref<1x96xf32, #tpu.memory_space<vmem>>, %arg5: memref<32x32xf32, #tpu.memory_space<vmem>>, %arg6: memref<1x32xf32, #tpu.memory_space<vmem>>, %arg7: memref<32x32xf32, #tpu.memory_space<vmem>>, %arg8: memref<1x32xf32, #tpu.memory_space<vmem>>, %arg9: memref<8x8x32xf32, #tpu.memory_space<vmem>>, %arg10: memref<8x8x32xf32, #tpu.memory_space<vmem>>, %arg11: memref<8x32xf32, #tpu.memory_space<vmem>>) attributes {dimension_semantics = [], scalar_prefetch = 0 : i64, scratch_operands = 0 : i64, tpu.core_type = #tpu.core_type<tc>} {
    %c0 = arith.constant 0 : index
    %c0_0 = arith.constant 0 : index
    %0 = vector.load %arg1[%c0, %c0_0] : memref<16x96xf32, #tpu.memory_space<vmem>>, vector<16x96xf32>
    %c0_1 = arith.constant 0 : index
    %c0_2 = arith.constant 0 : index
    %1 = vector.load %arg2[%c0_1, %c0_2] : memref<32x96xf32, #tpu.memory_space<vmem>>, vector<32x96xf32>
    %c0_3 = arith.constant 0 : index
    %c0_4 = arith.constant 0 : index
    %2 = vector.load %arg3[%c0_3, %c0_4] : memref<1x96xf32, #tpu.memory_space<vmem>>, vector<1x96xf32>
    %c0_5 = arith.constant 0 : index
    %c0_6 = arith.constant 0 : index
    %3 = vector.load %arg4[%c0_5, %c0_6] : memref<1x96xf32, #tpu.memory_space<vmem>>, vector<1x96xf32>
    %c0_7 = arith.constant 0 : index
    %c0_8 = arith.constant 0 : index
    %4 = vector.load %arg7[%c0_7, %c0_8] : memref<32x32xf32, #tpu.memory_space<vmem>>, vector<32x32xf32>
    %c0_9 = arith.constant 0 : index
    %c0_10 = arith.constant 0 : index
    %5 = vector.load %arg8[%c0_9, %c0_10] : memref<1x32xf32, #tpu.memory_space<vmem>>, vector<1x32xf32>
    %cst = arith.constant 0.000000e+00 : f32
    %6 = vector.broadcast %cst : f32 to vector<8x32xf32>
    %c0_11 = arith.constant 0 : index
    %c0_12 = arith.constant 0 : index
    %c0_13 = arith.constant 0 : index
    %7 = vector.load %arg0[%c0_11, %c0_12, %c0_13] : memref<8x8x16xf32, #tpu.memory_space<vmem>>, vector<1x8x16xf32>
    %8 = vector.shape_cast %7 : vector<1x8x16xf32> to vector<8x16xf32>
    %cst_14 = arith.constant dense<0.000000e+00> : vector<8x96xf32>
    %9 = tpu.matmul %8, %0, %cst_14 {dimension_numbers = #tpu.dot_dimension_numbers<[1], [0], [0], [1], [0, 0, 1, 1], [], []>} : vector<8x16xf32>, vector<16x96xf32>, vector<8x96xf32> -> vector<8x96xf32>
    %10 = vector.broadcast %2 : vector<1x96xf32> to vector<8x96xf32>
    %11 = arith.addf %9, %10 : vector<8x96xf32>
    %cst_15 = arith.constant dense<0.000000e+00> : vector<8x96xf32>
    %12 = tpu.matmul %6, %1, %cst_15 {dimension_numbers = #tpu.dot_dimension_numbers<[1], [0], [0], [1], [0, 0, 1, 1], [], []>} : vector<8x32xf32>, vector<32x96xf32>, vector<8x96xf32> -> vector<8x96xf32>
    %13 = vector.broadcast %3 : vector<1x96xf32> to vector<8x96xf32>
    %14 = arith.addf %12, %13 : vector<8x96xf32>
    %15 = vector.extract_strided_slice %11 {offsets = [0, 0], sizes = [8, 32], strides = [1, 1]} : vector<8x96xf32> to vector<8x32xf32>
    %16 = vector.extract_strided_slice %14 {offsets = [0, 0], sizes = [8, 32], strides = [1, 1]} : vector<8x96xf32> to vector<8x32xf32>
    %17 = arith.addf %15, %16 : vector<8x32xf32>
    %18 = arith.negf %17 : vector<8x32xf32>
    %19 = math.exp %18 : vector<8x32xf32>
    %cst_16 = arith.constant 1.000000e+00 : f32
    %20 = vector.broadcast %cst_16 : f32 to vector<8x32xf32>
    %21 = arith.addf %20, %19 : vector<8x32xf32>
    %22 = arith.divf %20, %21 : vector<8x32xf32>
    %23 = vector.extract_strided_slice %11 {offsets = [0, 32], sizes = [8, 32], strides = [1, 1]} : vector<8x96xf32> to vector<8x32xf32>
    %24 = vector.extract_strided_slice %14 {offsets = [0, 32], sizes = [8, 32], strides = [1, 1]} : vector<8x96xf32> to vector<8x32xf32>
    %25 = arith.addf %23, %24 : vector<8x32xf32>
    %26 = arith.negf %25 : vector<8x32xf32>
    %27 = math.exp %26 : vector<8x32xf32>
    %cst_17 = arith.constant 1.000000e+00 : f32
    %28 = vector.broadcast %cst_17 : f32 to vector<8x32xf32>
    %29 = arith.addf %28, %27 : vector<8x32xf32>
    %30 = arith.divf %28, %29 : vector<8x32xf32>
    %31 = vector.extract_strided_slice %11 {offsets = [0, 64], sizes = [8, 32], strides = [1, 1]} : vector<8x96xf32> to vector<8x32xf32>
    %32 = vector.extract_strided_slice %14 {offsets = [0, 64], sizes = [8, 32], strides = [1, 1]} : vector<8x96xf32> to vector<8x32xf32>
    %33 = arith.mulf %22, %32 : vector<8x32xf32>
    %34 = arith.addf %31, %33 : vector<8x32xf32>
    %35 = math.tanh %34 : vector<8x32xf32>
    %cst_18 = arith.constant 1.000000e+00 : f32
    %36 = vector.broadcast %cst_18 : f32 to vector<8x32xf32>
    %37 = arith.subf %36, %30 : vector<8x32xf32>
    %38 = arith.mulf %37, %35 : vector<8x32xf32>
    %39 = arith.mulf %30, %6 : vector<8x32xf32>
    %40 = arith.addf %38, %39 : vector<8x32xf32>
    %c0_19 = arith.constant 0 : index
    %c0_20 = arith.constant 0 : index
    %c0_21 = arith.constant 0 : index
    %41 = vector.load %arg9[%c0_19, %c0_20, %c0_21] : memref<8x8x32xf32, #tpu.memory_space<vmem>>, vector<1x8x32xf32>
    %42 = vector.shape_cast %41 : vector<1x8x32xf32> to vector<8x32xf32>
    %43 = vector.shape_cast %40 : vector<8x32xf32> to vector<1x8x32xf32>
    tpu.vector_store %arg9[%c0_19, %c0_20, %c0_21], %43 {strides = array<i32>} : memref<8x8x32xf32, #tpu.memory_space<vmem>>, vector<1x8x32xf32>,
    %cst_22 = arith.constant dense<0.000000e+00> : vector<8x32xf32>
    %44 = tpu.matmul %40, %4, %cst_22 {dimension_numbers = #tpu.dot_dimension_numbers<[1], [0], [0], [1], [0, 0, 1, 1], [], []>} : vector<8x32xf32>, vector<32x32xf32>, vector<8x32xf32> -> vector<8x32xf32>
    %45 = vector.broadcast %5 : vector<1x32xf32> to vector<8x32xf32>
    %46 = arith.addf %44, %45 : vector<8x32xf32>
    %c0_23 = arith.constant 0 : index
    %c0_24 = arith.constant 0 : index
    %c0_25 = arith.constant 0 : index
    %47 = vector.load %arg10[%c0_23, %c0_24, %c0_25] : memref<8x8x32xf32, #tpu.memory_space<vmem>>, vector<1x8x32xf32>
    %48 = vector.shape_cast %47 : vector<1x8x32xf32> to vector<8x32xf32>
    %49 = vector.shape_cast %46 : vector<8x32xf32> to vector<1x8x32xf32>
    tpu.vector_store %arg10[%c0_23, %c0_24, %c0_25], %49 {strides = array<i32>} : memref<8x8x32xf32, #tpu.memory_space<vmem>>, vector<1x8x32xf32>,
    %c1 = arith.constant 1 : index
    %c0_26 = arith.constant 0 : index
    %c0_27 = arith.constant 0 : index
    %50 = vector.load %arg0[%c1, %c0_26, %c0_27] : memref<8x8x16xf32, #tpu.memory_space<vmem>>, vector<1x8x16xf32>
    %51 = vector.shape_cast %50 : vector<1x8x16xf32> to vector<8x16xf32>
    %cst_28 = arith.constant dense<0.000000e+00> : vector<8x96xf32>
    %52 = tpu.matmul %51, %0, %cst_28 {dimension_numbers = #tpu.dot_dimension_numbers<[1], [0], [0], [1], [0, 0, 1, 1], [], []>} : vector<8x16xf32>, vector<16x96xf32>, vector<8x96xf32> -> vector<8x96xf32>
    %53 = vector.broadcast %2 : vector<1x96xf32> to vector<8x96xf32>
    %54 = arith.addf %52, %53 : vector<8x96xf32>
    %cst_29 = arith.constant dense<0.000000e+00> : vector<8x96xf32>
    %55 = tpu.matmul %40, %1, %cst_29 {dimension_numbers = #tpu.dot_dimension_numbers<[1], [0], [0], [1], [0, 0, 1, 1], [], []>} : vector<8x32xf32>, vector<32x96xf32>, vector<8x96xf32> -> vector<8x96xf32>
    %56 = vector.broadcast %3 : vector<1x96xf32> to vector<8x96xf32>
    %57 = arith.addf %55, %56 : vector<8x96xf32>
    %58 = vector.extract_strided_slice %54 {offsets = [0, 0], sizes = [8, 32], strides = [1, 1]} : vector<8x96xf32> to vector<8x32xf32>
    %59 = vector.extract_strided_slice %57 {offsets = [0, 0], sizes = [8, 32], strides = [1, 1]} : vector<8x96xf32> to vector<8x32xf32>
    %60 = arith.addf %58, %59 : vector<8x32xf32>
    %61 = arith.negf %60 : vector<8x32xf32>
    %62 = math.exp %61 : vector<8x32xf32>
    %cst_30 = arith.constant 1.000000e+00 : f32
    %63 = vector.broadcast %cst_30 : f32 to vector<8x32xf32>
    %64 = arith.addf %63, %62 : vector<8x32xf32>
    %65 = arith.divf %63, %64 : vector<8x32xf32>
    %66 = vector.extract_strided_slice %54 {offsets = [0, 32], sizes = [8, 32], strides = [1, 1]} : vector<8x96xf32> to vector<8x32xf32>
    %67 = vector.extract_strided_slice %57 {offsets = [0, 32], sizes = [8, 32], strides = [1, 1]} : vector<8x96xf32> to vector<8x32xf32>
    %68 = arith.addf %66, %67 : vector<8x32xf32>
    %69 = arith.negf %68 : vector<8x32xf32>
    %70 = math.exp %69 : vector<8x32xf32>
    %cst_31 = arith.constant 1.000000e+00 : f32
    %71 = vector.broadcast %cst_31 : f32 to vector<8x32xf32>
    %72 = arith.addf %71, %70 : vector<8x32xf32>
    %73 = arith.divf %71, %72 : vector<8x32xf32>
    %74 = vector.extract_strided_slice %54 {offsets = [0, 64], sizes = [8, 32], strides = [1, 1]} : vector<8x96xf32> to vector<8x32xf32>
    %75 = vector.extract_strided_slice %57 {offsets = [0, 64], sizes = [8, 32], strides = [1, 1]} : vector<8x96xf32> to vector<8x32xf32>
    %76 = arith.mulf %65, %75 : vector<8x32xf32>
    %77 = arith.addf %74, %76 : vector<8x32xf32>
    %78 = math.tanh %77 : vector<8x32xf32>
    %cst_32 = arith.constant 1.000000e+00 : f32
    %79 = vector.broadcast %cst_32 : f32 to vector<8x32xf32>
    %80 = arith.subf %79, %73 : vector<8x32xf32>
    %81 = arith.mulf %80, %78 : vector<8x32xf32>
    %82 = arith.mulf %73, %40 : vector<8x32xf32>
    %83 = arith.addf %81, %82 : vector<8x32xf32>
    %c1_33 = arith.constant 1 : index
    %c0_34 = arith.constant 0 : index
    %c0_35 = arith.constant 0 : index
    %84 = vector.load %arg9[%c1_33, %c0_34, %c0_35] : memref<8x8x32xf32, #tpu.memory_space<vmem>>, vector<1x8x32xf32>
    %85 = vector.shape_cast %84 : vector<1x8x32xf32> to vector<8x32xf32>
    %86 = vector.shape_cast %83 : vector<8x32xf32> to vector<1x8x32xf32>
    tpu.vector_store %arg9[%c1_33, %c0_34, %c0_35], %86 {strides = array<i32>} : memref<8x8x32xf32, #tpu.memory_space<vmem>>, vector<1x8x32xf32>,
    %cst_36 = arith.constant dense<0.000000e+00> : vector<8x32xf32>
    %87 = tpu.matmul %83, %4, %cst_36 {dimension_numbers = #tpu.dot_dimension_numbers<[1], [0], [0], [1], [0, 0, 1, 1], [], []>} : vector<8x32xf32>, vector<32x32xf32>, vector<8x32xf32> -> vector<8x32xf32>
    %88 = vector.broadcast %5 : vector<1x32xf32> to vector<8x32xf32>
    %89 = arith.addf %87, %88 : vector<8x32xf32>
    %c1_37 = arith.constant 1 : index
    %c0_38 = arith.constant 0 : index
    %c0_39 = arith.constant 0 : index
    %90 = vector.load %arg10[%c1_37, %c0_38, %c0_39] : memref<8x8x32xf32, #tpu.memory_space<vmem>>, vector<1x8x32xf32>
    %91 = vector.shape_cast %90 : vector<1x8x32xf32> to vector<8x32xf32>
    %92 = vector.shape_cast %89 : vector<8x32xf32> to vector<1x8x32xf32>
    tpu.vector_store %arg10[%c1_37, %c0_38, %c0_39], %92 {strides = array<i32>} : memref<8x8x32xf32, #tpu.memory_space<vmem>>, vector<1x8x32xf32>,
    %c2 = arith.constant 2 : index
    %c0_40 = arith.constant 0 : index
    %c0_41 = arith.constant 0 : index
    %93 = vector.load %arg0[%c2, %c0_40, %c0_41] : memref<8x8x16xf32, #tpu.memory_space<vmem>>, vector<1x8x16xf32>
    %94 = vector.shape_cast %93 : vector<1x8x16xf32> to vector<8x16xf32>
    %cst_42 = arith.constant dense<0.000000e+00> : vector<8x96xf32>
    %95 = tpu.matmul %94, %0, %cst_42 {dimension_numbers = #tpu.dot_dimension_numbers<[1], [0], [0], [1], [0, 0, 1, 1], [], []>} : vector<8x16xf32>, vector<16x96xf32>, vector<8x96xf32> -> vector<8x96xf32>
    %96 = vector.broadcast %2 : vector<1x96xf32> to vector<8x96xf32>
    %97 = arith.addf %95, %96 : vector<8x96xf32>
    %cst_43 = arith.constant dense<0.000000e+00> : vector<8x96xf32>
    %98 = tpu.matmul %83, %1, %cst_43 {dimension_numbers = #tpu.dot_dimension_numbers<[1], [0], [0], [1], [0, 0, 1, 1], [], []>} : vector<8x32xf32>, vector<32x96xf32>, vector<8x96xf32> -> vector<8x96xf32>
    %99 = vector.broadcast %3 : vector<1x96xf32> to vector<8x96xf32>
    %100 = arith.addf %98, %99 : vector<8x96xf32>
    %101 = vector.extract_strided_slice %97 {offsets = [0, 0], sizes = [8, 32], strides = [1, 1]} : vector<8x96xf32> to vector<8x32xf32>
    %102 = vector.extract_strided_slice %100 {offsets = [0, 0], sizes = [8, 32], strides = [1, 1]} : vector<8x96xf32> to vector<8x32xf32>
    %103 = arith.addf %101, %102 : vector<8x32xf32>
    %104 = arith.negf %103 : vector<8x32xf32>
    %105 = math.exp %104 : vector<8x32xf32>
    %cst_44 = arith.constant 1.000000e+00 : f32
    %106 = vector.broadcast %cst_44 : f32 to vector<8x32xf32>
    %107 = arith.addf %106, %105 : vector<8x32xf32>
    %108 = arith.divf %106, %107 : vector<8x32xf32>
    %109 = vector.extract_strided_slice %97 {offsets = [0, 32], sizes = [8, 32], strides = [1, 1]} : vector<8x96xf32> to vector<8x32xf32>
    %110 = vector.extract_strided_slice %100 {offsets = [0, 32], sizes = [8, 32], strides = [1, 1]} : vector<8x96xf32> to vector<8x32xf32>
    %111 = arith.addf %109, %110 : vector<8x32xf32>
    %112 = arith.negf %111 : vector<8x32xf32>
    %113 = math.exp %112 : vector<8x32xf32>
    %cst_45 = arith.constant 1.000000e+00 : f32
    %114 = vector.broadcast %cst_45 : f32 to vector<8x32xf32>
    %115 = arith.addf %114, %113 : vector<8x32xf32>
    %116 = arith.divf %114, %115 : vector<8x32xf32>
    %117 = vector.extract_strided_slice %97 {offsets = [0, 64], sizes = [8, 32], strides = [1, 1]} : vector<8x96xf32> to vector<8x32xf32>
    %118 = vector.extract_strided_slice %100 {offsets = [0, 64], sizes = [8, 32], strides = [1, 1]} : vector<8x96xf32> to vector<8x32xf32>
    %119 = arith.mulf %108, %118 : vector<8x32xf32>
    %120 = arith.addf %117, %119 : vector<8x32xf32>
    %121 = math.tanh %120 : vector<8x32xf32>
    %cst_46 = arith.constant 1.000000e+00 : f32
    %122 = vector.broadcast %cst_46 : f32 to vector<8x32xf32>
    %123 = arith.subf %122, %116 : vector<8x32xf32>
    %124 = arith.mulf %123, %121 : vector<8x32xf32>
    %125 = arith.mulf %116, %83 : vector<8x32xf32>
    %126 = arith.addf %124, %125 : vector<8x32xf32>
    %c2_47 = arith.constant 2 : index
    %c0_48 = arith.constant 0 : index
    %c0_49 = arith.constant 0 : index
    %127 = vector.load %arg9[%c2_47, %c0_48, %c0_49] : memref<8x8x32xf32, #tpu.memory_space<vmem>>, vector<1x8x32xf32>
    %128 = vector.shape_cast %127 : vector<1x8x32xf32> to vector<8x32xf32>
    %129 = vector.shape_cast %126 : vector<8x32xf32> to vector<1x8x32xf32>
    tpu.vector_store %arg9[%c2_47, %c0_48, %c0_49], %129 {strides = array<i32>} : memref<8x8x32xf32, #tpu.memory_space<vmem>>, vector<1x8x32xf32>,
    %cst_50 = arith.constant dense<0.000000e+00> : vector<8x32xf32>
    %130 = tpu.matmul %126, %4, %cst_50 {dimension_numbers = #tpu.dot_dimension_numbers<[1], [0], [0], [1], [0, 0, 1, 1], [], []>} : vector<8x32xf32>, vector<32x32xf32>, vector<8x32xf32> -> vector<8x32xf32>
    %131 = vector.broadcast %5 : vector<1x32xf32> to vector<8x32xf32>
    %132 = arith.addf %130, %131 : vector<8x32xf32>
    %c2_51 = arith.constant 2 : index
    %c0_52 = arith.constant 0 : index
    %c0_53 = arith.constant 0 : index
    %133 = vector.load %arg10[%c2_51, %c0_52, %c0_53] : memref<8x8x32xf32, #tpu.memory_space<vmem>>, vector<1x8x32xf32>
    %134 = vector.shape_cast %133 : vector<1x8x32xf32> to vector<8x32xf32>
    %135 = vector.shape_cast %132 : vector<8x32xf32> to vector<1x8x32xf32>
    tpu.vector_store %arg10[%c2_51, %c0_52, %c0_53], %135 {strides = array<i32>} : memref<8x8x32xf32, #tpu.memory_space<vmem>>, vector<1x8x32xf32>,
    %c3 = arith.constant 3 : index
    %c0_54 = arith.constant 0 : index
    %c0_55 = arith.constant 0 : index
    %136 = vector.load %arg0[%c3, %c0_54, %c0_55] : memref<8x8x16xf32, #tpu.memory_space<vmem>>, vector<1x8x16xf32>
    %137 = vector.shape_cast %136 : vector<1x8x16xf32> to vector<8x16xf32>
    %cst_56 = arith.constant dense<0.000000e+00> : vector<8x96xf32>
    %138 = tpu.matmul %137, %0, %cst_56 {dimension_numbers = #tpu.dot_dimension_numbers<[1], [0], [0], [1], [0, 0, 1, 1], [], []>} : vector<8x16xf32>, vector<16x96xf32>, vector<8x96xf32> -> vector<8x96xf32>
    %139 = vector.broadcast %2 : vector<1x96xf32> to vector<8x96xf32>
    %140 = arith.addf %138, %139 : vector<8x96xf32>
    %cst_57 = arith.constant dense<0.000000e+00> : vector<8x96xf32>
    %141 = tpu.matmul %126, %1, %cst_57 {dimension_numbers = #tpu.dot_dimension_numbers<[1], [0], [0], [1], [0, 0, 1, 1], [], []>} : vector<8x32xf32>, vector<32x96xf32>, vector<8x96xf32> -> vector<8x96xf32>
    %142 = vector.broadcast %3 : vector<1x96xf32> to vector<8x96xf32>
    %143 = arith.addf %141, %142 : vector<8x96xf32>
    %144 = vector.extract_strided_slice %140 {offsets = [0, 0], sizes = [8, 32], strides = [1, 1]} : vector<8x96xf32> to vector<8x32xf32>
    %145 = vector.extract_strided_slice %143 {offsets = [0, 0], sizes = [8, 32], strides = [1, 1]} : vector<8x96xf32> to vector<8x32xf32>
    %146 = arith.addf %144, %145 : vector<8x32xf32>
    %147 = arith.negf %146 : vector<8x32xf32>
    %148 = math.exp %147 : vector<8x32xf32>
    %cst_58 = arith.constant 1.000000e+00 : f32
    %149 = vector.broadcast %cst_58 : f32 to vector<8x32xf32>
    %150 = arith.addf %149, %148 : vector<8x32xf32>
    %151 = arith.divf %149, %150 : vector<8x32xf32>
    %152 = vector.extract_strided_slice %140 {offsets = [0, 32], sizes = [8, 32], strides = [1, 1]} : vector<8x96xf32> to vector<8x32xf32>
    %153 = vector.extract_strided_slice %143 {offsets = [0, 32], sizes = [8, 32], strides = [1, 1]} : vector<8x96xf32> to vector<8x32xf32>
    %154 = arith.addf %152, %153 : vector<8x32xf32>
    %155 = arith.negf %154 : vector<8x32xf32>
    %156 = math.exp %155 : vector<8x32xf32>
    %cst_59 = arith.constant 1.000000e+00 : f32
    %157 = vector.broadcast %cst_59 : f32 to vector<8x32xf32>
    %158 = arith.addf %157, %156 : vector<8x32xf32>
    %159 = arith.divf %157, %158 : vector<8x32xf32>
    %160 = vector.extract_strided_slice %140 {offsets = [0, 64], sizes = [8, 32], strides = [1, 1]} : vector<8x96xf32> to vector<8x32xf32>
    %161 = vector.extract_strided_slice %143 {offsets = [0, 64], sizes = [8, 32], strides = [1, 1]} : vector<8x96xf32> to vector<8x32xf32>
    %162 = arith.mulf %151, %161 : vector<8x32xf32>
    %163 = arith.addf %160, %162 : vector<8x32xf32>
    %164 = math.tanh %163 : vector<8x32xf32>
    %cst_60 = arith.constant 1.000000e+00 : f32
    %165 = vector.broadcast %cst_60 : f32 to vector<8x32xf32>
    %166 = arith.subf %165, %159 : vector<8x32xf32>
    %167 = arith.mulf %166, %164 : vector<8x32xf32>
    %168 = arith.mulf %159, %126 : vector<8x32xf32>
    %169 = arith.addf %167, %168 : vector<8x32xf32>
    %c3_61 = arith.constant 3 : index
    %c0_62 = arith.constant 0 : index
    %c0_63 = arith.constant 0 : index
    %170 = vector.load %arg9[%c3_61, %c0_62, %c0_63] : memref<8x8x32xf32, #tpu.memory_space<vmem>>, vector<1x8x32xf32>
    %171 = vector.shape_cast %170 : vector<1x8x32xf32> to vector<8x32xf32>
    %172 = vector.shape_cast %169 : vector<8x32xf32> to vector<1x8x32xf32>
    tpu.vector_store %arg9[%c3_61, %c0_62, %c0_63], %172 {strides = array<i32>} : memref<8x8x32xf32, #tpu.memory_space<vmem>>, vector<1x8x32xf32>,
    %cst_64 = arith.constant dense<0.000000e+00> : vector<8x32xf32>
    %173 = tpu.matmul %169, %4, %cst_64 {dimension_numbers = #tpu.dot_dimension_numbers<[1], [0], [0], [1], [0, 0, 1, 1], [], []>} : vector<8x32xf32>, vector<32x32xf32>, vector<8x32xf32> -> vector<8x32xf32>
    %174 = vector.broadcast %5 : vector<1x32xf32> to vector<8x32xf32>
    %175 = arith.addf %173, %174 : vector<8x32xf32>
    %c3_65 = arith.constant 3 : index
    %c0_66 = arith.constant 0 : index
    %c0_67 = arith.constant 0 : index
    %176 = vector.load %arg10[%c3_65, %c0_66, %c0_67] : memref<8x8x32xf32, #tpu.memory_space<vmem>>, vector<1x8x32xf32>
    %177 = vector.shape_cast %176 : vector<1x8x32xf32> to vector<8x32xf32>
    %178 = vector.shape_cast %175 : vector<8x32xf32> to vector<1x8x32xf32>
    tpu.vector_store %arg10[%c3_65, %c0_66, %c0_67], %178 {strides = array<i32>} : memref<8x8x32xf32, #tpu.memory_space<vmem>>, vector<1x8x32xf32>,
    %c4 = arith.constant 4 : index
    %c0_68 = arith.constant 0 : index
    %c0_69 = arith.constant 0 : index
    %179 = vector.load %arg0[%c4, %c0_68, %c0_69] : memref<8x8x16xf32, #tpu.memory_space<vmem>>, vector<1x8x16xf32>
    %180 = vector.shape_cast %179 : vector<1x8x16xf32> to vector<8x16xf32>
    %cst_70 = arith.constant dense<0.000000e+00> : vector<8x96xf32>
    %181 = tpu.matmul %180, %0, %cst_70 {dimension_numbers = #tpu.dot_dimension_numbers<[1], [0], [0], [1], [0, 0, 1, 1], [], []>} : vector<8x16xf32>, vector<16x96xf32>, vector<8x96xf32> -> vector<8x96xf32>
    %182 = vector.broadcast %2 : vector<1x96xf32> to vector<8x96xf32>
    %183 = arith.addf %181, %182 : vector<8x96xf32>
    %cst_71 = arith.constant dense<0.000000e+00> : vector<8x96xf32>
    %184 = tpu.matmul %169, %1, %cst_71 {dimension_numbers = #tpu.dot_dimension_numbers<[1], [0], [0], [1], [0, 0, 1, 1], [], []>} : vector<8x32xf32>, vector<32x96xf32>, vector<8x96xf32> -> vector<8x96xf32>
    %185 = vector.broadcast %3 : vector<1x96xf32> to vector<8x96xf32>
    %186 = arith.addf %184, %185 : vector<8x96xf32>
    %187 = vector.extract_strided_slice %183 {offsets = [0, 0], sizes = [8, 32], strides = [1, 1]} : vector<8x96xf32> to vector<8x32xf32>
    %188 = vector.extract_strided_slice %186 {offsets = [0, 0], sizes = [8, 32], strides = [1, 1]} : vector<8x96xf32> to vector<8x32xf32>
    %189 = arith.addf %187, %188 : vector<8x32xf32>
    %190 = arith.negf %189 : vector<8x32xf32>
    %191 = math.exp %190 : vector<8x32xf32>
    %cst_72 = arith.constant 1.000000e+00 : f32
    %192 = vector.broadcast %cst_72 : f32 to vector<8x32xf32>
    %193 = arith.addf %192, %191 : vector<8x32xf32>
    %194 = arith.divf %192, %193 : vector<8x32xf32>
    %195 = vector.extract_strided_slice %183 {offsets = [0, 32], sizes = [8, 32], strides = [1, 1]} : vector<8x96xf32> to vector<8x32xf32>
    %196 = vector.extract_strided_slice %186 {offsets = [0, 32], sizes = [8, 32], strides = [1, 1]} : vector<8x96xf32> to vector<8x32xf32>
    %197 = arith.addf %195, %196 : vector<8x32xf32>
    %198 = arith.negf %197 : vector<8x32xf32>
    %199 = math.exp %198 : vector<8x32xf32>
    %cst_73 = arith.constant 1.000000e+00 : f32
    %200 = vector.broadcast %cst_73 : f32 to vector<8x32xf32>
    %201 = arith.addf %200, %199 : vector<8x32xf32>
    %202 = arith.divf %200, %201 : vector<8x32xf32>
    %203 = vector.extract_strided_slice %183 {offsets = [0, 64], sizes = [8, 32], strides = [1, 1]} : vector<8x96xf32> to vector<8x32xf32>
    %204 = vector.extract_strided_slice %186 {offsets = [0, 64], sizes = [8, 32], strides = [1, 1]} : vector<8x96xf32> to vector<8x32xf32>
    %205 = arith.mulf %194, %204 : vector<8x32xf32>
    %206 = arith.addf %203, %205 : vector<8x32xf32>
    %207 = math.tanh %206 : vector<8x32xf32>
    %cst_74 = arith.constant 1.000000e+00 : f32
    %208 = vector.broadcast %cst_74 : f32 to vector<8x32xf32>
    %209 = arith.subf %208, %202 : vector<8x32xf32>
    %210 = arith.mulf %209, %207 : vector<8x32xf32>
    %211 = arith.mulf %202, %169 : vector<8x32xf32>
    %212 = arith.addf %210, %211 : vector<8x32xf32>
    %c4_75 = arith.constant 4 : index
    %c0_76 = arith.constant 0 : index
    %c0_77 = arith.constant 0 : index
    %213 = vector.load %arg9[%c4_75, %c0_76, %c0_77] : memref<8x8x32xf32, #tpu.memory_space<vmem>>, vector<1x8x32xf32>
    %214 = vector.shape_cast %213 : vector<1x8x32xf32> to vector<8x32xf32>
    %215 = vector.shape_cast %212 : vector<8x32xf32> to vector<1x8x32xf32>
    tpu.vector_store %arg9[%c4_75, %c0_76, %c0_77], %215 {strides = array<i32>} : memref<8x8x32xf32, #tpu.memory_space<vmem>>, vector<1x8x32xf32>,
    %cst_78 = arith.constant dense<0.000000e+00> : vector<8x32xf32>
    %216 = tpu.matmul %212, %4, %cst_78 {dimension_numbers = #tpu.dot_dimension_numbers<[1], [0], [0], [1], [0, 0, 1, 1], [], []>} : vector<8x32xf32>, vector<32x32xf32>, vector<8x32xf32> -> vector<8x32xf32>
    %217 = vector.broadcast %5 : vector<1x32xf32> to vector<8x32xf32>
    %218 = arith.addf %216, %217 : vector<8x32xf32>
    %c4_79 = arith.constant 4 : index
    %c0_80 = arith.constant 0 : index
    %c0_81 = arith.constant 0 : index
    %219 = vector.load %arg10[%c4_79, %c0_80, %c0_81] : memref<8x8x32xf32, #tpu.memory_space<vmem>>, vector<1x8x32xf32>
    %220 = vector.shape_cast %219 : vector<1x8x32xf32> to vector<8x32xf32>
    %221 = vector.shape_cast %218 : vector<8x32xf32> to vector<1x8x32xf32>
    tpu.vector_store %arg10[%c4_79, %c0_80, %c0_81], %221 {strides = array<i32>} : memref<8x8x32xf32, #tpu.memory_space<vmem>>, vector<1x8x32xf32>,
    %c5 = arith.constant 5 : index
    %c0_82 = arith.constant 0 : index
    %c0_83 = arith.constant 0 : index
    %222 = vector.load %arg0[%c5, %c0_82, %c0_83] : memref<8x8x16xf32, #tpu.memory_space<vmem>>, vector<1x8x16xf32>
    %223 = vector.shape_cast %222 : vector<1x8x16xf32> to vector<8x16xf32>
    %cst_84 = arith.constant dense<0.000000e+00> : vector<8x96xf32>
    %224 = tpu.matmul %223, %0, %cst_84 {dimension_numbers = #tpu.dot_dimension_numbers<[1], [0], [0], [1], [0, 0, 1, 1], [], []>} : vector<8x16xf32>, vector<16x96xf32>, vector<8x96xf32> -> vector<8x96xf32>
    %225 = vector.broadcast %2 : vector<1x96xf32> to vector<8x96xf32>
    %226 = arith.addf %224, %225 : vector<8x96xf32>
    %cst_85 = arith.constant dense<0.000000e+00> : vector<8x96xf32>
    %227 = tpu.matmul %212, %1, %cst_85 {dimension_numbers = #tpu.dot_dimension_numbers<[1], [0], [0], [1], [0, 0, 1, 1], [], []>} : vector<8x32xf32>, vector<32x96xf32>, vector<8x96xf32> -> vector<8x96xf32>
    %228 = vector.broadcast %3 : vector<1x96xf32> to vector<8x96xf32>
    %229 = arith.addf %227, %228 : vector<8x96xf32>
    %230 = vector.extract_strided_slice %226 {offsets = [0, 0], sizes = [8, 32], strides = [1, 1]} : vector<8x96xf32> to vector<8x32xf32>
    %231 = vector.extract_strided_slice %229 {offsets = [0, 0], sizes = [8, 32], strides = [1, 1]} : vector<8x96xf32> to vector<8x32xf32>
    %232 = arith.addf %230, %231 : vector<8x32xf32>
    %233 = arith.negf %232 : vector<8x32xf32>
    %234 = math.exp %233 : vector<8x32xf32>
    %cst_86 = arith.constant 1.000000e+00 : f32
    %235 = vector.broadcast %cst_86 : f32 to vector<8x32xf32>
    %236 = arith.addf %235, %234 : vector<8x32xf32>
    %237 = arith.divf %235, %236 : vector<8x32xf32>
    %238 = vector.extract_strided_slice %226 {offsets = [0, 32], sizes = [8, 32], strides = [1, 1]} : vector<8x96xf32> to vector<8x32xf32>
    %239 = vector.extract_strided_slice %229 {offsets = [0, 32], sizes = [8, 32], strides = [1, 1]} : vector<8x96xf32> to vector<8x32xf32>
    %240 = arith.addf %238, %239 : vector<8x32xf32>
    %241 = arith.negf %240 : vector<8x32xf32>
    %242 = math.exp %241 : vector<8x32xf32>
    %cst_87 = arith.constant 1.000000e+00 : f32
    %243 = vector.broadcast %cst_87 : f32 to vector<8x32xf32>
    %244 = arith.addf %243, %242 : vector<8x32xf32>
    %245 = arith.divf %243, %244 : vector<8x32xf32>
    %246 = vector.extract_strided_slice %226 {offsets = [0, 64], sizes = [8, 32], strides = [1, 1]} : vector<8x96xf32> to vector<8x32xf32>
    %247 = vector.extract_strided_slice %229 {offsets = [0, 64], sizes = [8, 32], strides = [1, 1]} : vector<8x96xf32> to vector<8x32xf32>
    %248 = arith.mulf %237, %247 : vector<8x32xf32>
    %249 = arith.addf %246, %248 : vector<8x32xf32>
    %250 = math.tanh %249 : vector<8x32xf32>
    %cst_88 = arith.constant 1.000000e+00 : f32
    %251 = vector.broadcast %cst_88 : f32 to vector<8x32xf32>
    %252 = arith.subf %251, %245 : vector<8x32xf32>
    %253 = arith.mulf %252, %250 : vector<8x32xf32>
    %254 = arith.mulf %245, %212 : vector<8x32xf32>
    %255 = arith.addf %253, %254 : vector<8x32xf32>
    %c5_89 = arith.constant 5 : index
    %c0_90 = arith.constant 0 : index
    %c0_91 = arith.constant 0 : index
    %256 = vector.load %arg9[%c5_89, %c0_90, %c0_91] : memref<8x8x32xf32, #tpu.memory_space<vmem>>, vector<1x8x32xf32>
    %257 = vector.shape_cast %256 : vector<1x8x32xf32> to vector<8x32xf32>
    %258 = vector.shape_cast %255 : vector<8x32xf32> to vector<1x8x32xf32>
    tpu.vector_store %arg9[%c5_89, %c0_90, %c0_91], %258 {strides = array<i32>} : memref<8x8x32xf32, #tpu.memory_space<vmem>>, vector<1x8x32xf32>,
    %cst_92 = arith.constant dense<0.000000e+00> : vector<8x32xf32>
    %259 = tpu.matmul %255, %4, %cst_92 {dimension_numbers = #tpu.dot_dimension_numbers<[1], [0], [0], [1], [0, 0, 1, 1], [], []>} : vector<8x32xf32>, vector<32x32xf32>, vector<8x32xf32> -> vector<8x32xf32>
    %260 = vector.broadcast %5 : vector<1x32xf32> to vector<8x32xf32>
    %261 = arith.addf %259, %260 : vector<8x32xf32>
    %c5_93 = arith.constant 5 : index
    %c0_94 = arith.constant 0 : index
    %c0_95 = arith.constant 0 : index
    %262 = vector.load %arg10[%c5_93, %c0_94, %c0_95] : memref<8x8x32xf32, #tpu.memory_space<vmem>>, vector<1x8x32xf32>
    %263 = vector.shape_cast %262 : vector<1x8x32xf32> to vector<8x32xf32>
    %264 = vector.shape_cast %261 : vector<8x32xf32> to vector<1x8x32xf32>
    tpu.vector_store %arg10[%c5_93, %c0_94, %c0_95], %264 {strides = array<i32>} : memref<8x8x32xf32, #tpu.memory_space<vmem>>, vector<1x8x32xf32>,
    %c6 = arith.constant 6 : index
    %c0_96 = arith.constant 0 : index
    %c0_97 = arith.constant 0 : index
    %265 = vector.load %arg0[%c6, %c0_96, %c0_97] : memref<8x8x16xf32, #tpu.memory_space<vmem>>, vector<1x8x16xf32>
    %266 = vector.shape_cast %265 : vector<1x8x16xf32> to vector<8x16xf32>
    %cst_98 = arith.constant dense<0.000000e+00> : vector<8x96xf32>
    %267 = tpu.matmul %266, %0, %cst_98 {dimension_numbers = #tpu.dot_dimension_numbers<[1], [0], [0], [1], [0, 0, 1, 1], [], []>} : vector<8x16xf32>, vector<16x96xf32>, vector<8x96xf32> -> vector<8x96xf32>
    %268 = vector.broadcast %2 : vector<1x96xf32> to vector<8x96xf32>
    %269 = arith.addf %267, %268 : vector<8x96xf32>
    %cst_99 = arith.constant dense<0.000000e+00> : vector<8x96xf32>
    %270 = tpu.matmul %255, %1, %cst_99 {dimension_numbers = #tpu.dot_dimension_numbers<[1], [0], [0], [1], [0, 0, 1, 1], [], []>} : vector<8x32xf32>, vector<32x96xf32>, vector<8x96xf32> -> vector<8x96xf32>
    %271 = vector.broadcast %3 : vector<1x96xf32> to vector<8x96xf32>
    %272 = arith.addf %270, %271 : vector<8x96xf32>
    %273 = vector.extract_strided_slice %269 {offsets = [0, 0], sizes = [8, 32], strides = [1, 1]} : vector<8x96xf32> to vector<8x32xf32>
    %274 = vector.extract_strided_slice %272 {offsets = [0, 0], sizes = [8, 32], strides = [1, 1]} : vector<8x96xf32> to vector<8x32xf32>
    %275 = arith.addf %273, %274 : vector<8x32xf32>
    %276 = arith.negf %275 : vector<8x32xf32>
    %277 = math.exp %276 : vector<8x32xf32>
    %cst_100 = arith.constant 1.000000e+00 : f32
    %278 = vector.broadcast %cst_100 : f32 to vector<8x32xf32>
    %279 = arith.addf %278, %277 : vector<8x32xf32>
    %280 = arith.divf %278, %279 : vector<8x32xf32>
    %281 = vector.extract_strided_slice %269 {offsets = [0, 32], sizes = [8, 32], strides = [1, 1]} : vector<8x96xf32> to vector<8x32xf32>
    %282 = vector.extract_strided_slice %272 {offsets = [0, 32], sizes = [8, 32], strides = [1, 1]} : vector<8x96xf32> to vector<8x32xf32>
    %283 = arith.addf %281, %282 : vector<8x32xf32>
    %284 = arith.negf %283 : vector<8x32xf32>
    %285 = math.exp %284 : vector<8x32xf32>
    %cst_101 = arith.constant 1.000000e+00 : f32
    %286 = vector.broadcast %cst_101 : f32 to vector<8x32xf32>
    %287 = arith.addf %286, %285 : vector<8x32xf32>
    %288 = arith.divf %286, %287 : vector<8x32xf32>
    %289 = vector.extract_strided_slice %269 {offsets = [0, 64], sizes = [8, 32], strides = [1, 1]} : vector<8x96xf32> to vector<8x32xf32>
    %290 = vector.extract_strided_slice %272 {offsets = [0, 64], sizes = [8, 32], strides = [1, 1]} : vector<8x96xf32> to vector<8x32xf32>
    %291 = arith.mulf %280, %290 : vector<8x32xf32>
    %292 = arith.addf %289, %291 : vector<8x32xf32>
    %293 = math.tanh %292 : vector<8x32xf32>
    %cst_102 = arith.constant 1.000000e+00 : f32
    %294 = vector.broadcast %cst_102 : f32 to vector<8x32xf32>
    %295 = arith.subf %294, %288 : vector<8x32xf32>
    %296 = arith.mulf %295, %293 : vector<8x32xf32>
    %297 = arith.mulf %288, %255 : vector<8x32xf32>
    %298 = arith.addf %296, %297 : vector<8x32xf32>
    %c6_103 = arith.constant 6 : index
    %c0_104 = arith.constant 0 : index
    %c0_105 = arith.constant 0 : index
    %299 = vector.load %arg9[%c6_103, %c0_104, %c0_105] : memref<8x8x32xf32, #tpu.memory_space<vmem>>, vector<1x8x32xf32>
    %300 = vector.shape_cast %299 : vector<1x8x32xf32> to vector<8x32xf32>
    %301 = vector.shape_cast %298 : vector<8x32xf32> to vector<1x8x32xf32>
    tpu.vector_store %arg9[%c6_103, %c0_104, %c0_105], %301 {strides = array<i32>} : memref<8x8x32xf32, #tpu.memory_space<vmem>>, vector<1x8x32xf32>,
    %cst_106 = arith.constant dense<0.000000e+00> : vector<8x32xf32>
    %302 = tpu.matmul %298, %4, %cst_106 {dimension_numbers = #tpu.dot_dimension_numbers<[1], [0], [0], [1], [0, 0, 1, 1], [], []>} : vector<8x32xf32>, vector<32x32xf32>, vector<8x32xf32> -> vector<8x32xf32>
    %303 = vector.broadcast %5 : vector<1x32xf32> to vector<8x32xf32>
    %304 = arith.addf %302, %303 : vector<8x32xf32>
    %c6_107 = arith.constant 6 : index
    %c0_108 = arith.constant 0 : index
    %c0_109 = arith.constant 0 : index
    %305 = vector.load %arg10[%c6_107, %c0_108, %c0_109] : memref<8x8x32xf32, #tpu.memory_space<vmem>>, vector<1x8x32xf32>
    %306 = vector.shape_cast %305 : vector<1x8x32xf32> to vector<8x32xf32>
    %307 = vector.shape_cast %304 : vector<8x32xf32> to vector<1x8x32xf32>
    tpu.vector_store %arg10[%c6_107, %c0_108, %c0_109], %307 {strides = array<i32>} : memref<8x8x32xf32, #tpu.memory_space<vmem>>, vector<1x8x32xf32>,
    %c7 = arith.constant 7 : index
    %c0_110 = arith.constant 0 : index
    %c0_111 = arith.constant 0 : index
    %308 = vector.load %arg0[%c7, %c0_110, %c0_111] : memref<8x8x16xf32, #tpu.memory_space<vmem>>, vector<1x8x16xf32>
    %309 = vector.shape_cast %308 : vector<1x8x16xf32> to vector<8x16xf32>
    %cst_112 = arith.constant dense<0.000000e+00> : vector<8x96xf32>
    %310 = tpu.matmul %309, %0, %cst_112 {dimension_numbers = #tpu.dot_dimension_numbers<[1], [0], [0], [1], [0, 0, 1, 1], [], []>} : vector<8x16xf32>, vector<16x96xf32>, vector<8x96xf32> -> vector<8x96xf32>
    %311 = vector.broadcast %2 : vector<1x96xf32> to vector<8x96xf32>
    %312 = arith.addf %310, %311 : vector<8x96xf32>
    %cst_113 = arith.constant dense<0.000000e+00> : vector<8x96xf32>
    %313 = tpu.matmul %298, %1, %cst_113 {dimension_numbers = #tpu.dot_dimension_numbers<[1], [0], [0], [1], [0, 0, 1, 1], [], []>} : vector<8x32xf32>, vector<32x96xf32>, vector<8x96xf32> -> vector<8x96xf32>
    %314 = vector.broadcast %3 : vector<1x96xf32> to vector<8x96xf32>
    %315 = arith.addf %313, %314 : vector<8x96xf32>
    %316 = vector.extract_strided_slice %312 {offsets = [0, 0], sizes = [8, 32], strides = [1, 1]} : vector<8x96xf32> to vector<8x32xf32>
    %317 = vector.extract_strided_slice %315 {offsets = [0, 0], sizes = [8, 32], strides = [1, 1]} : vector<8x96xf32> to vector<8x32xf32>
    %318 = arith.addf %316, %317 : vector<8x32xf32>
    %319 = arith.negf %318 : vector<8x32xf32>
    %320 = math.exp %319 : vector<8x32xf32>
    %cst_114 = arith.constant 1.000000e+00 : f32
    %321 = vector.broadcast %cst_114 : f32 to vector<8x32xf32>
    %322 = arith.addf %321, %320 : vector<8x32xf32>
    %323 = arith.divf %321, %322 : vector<8x32xf32>
    %324 = vector.extract_strided_slice %312 {offsets = [0, 32], sizes = [8, 32], strides = [1, 1]} : vector<8x96xf32> to vector<8x32xf32>
    %325 = vector.extract_strided_slice %315 {offsets = [0, 32], sizes = [8, 32], strides = [1, 1]} : vector<8x96xf32> to vector<8x32xf32>
    %326 = arith.addf %324, %325 : vector<8x32xf32>
    %327 = arith.negf %326 : vector<8x32xf32>
    %328 = math.exp %327 : vector<8x32xf32>
    %cst_115 = arith.constant 1.000000e+00 : f32
    %329 = vector.broadcast %cst_115 : f32 to vector<8x32xf32>
    %330 = arith.addf %329, %328 : vector<8x32xf32>
    %331 = arith.divf %329, %330 : vector<8x32xf32>
    %332 = vector.extract_strided_slice %312 {offsets = [0, 64], sizes = [8, 32], strides = [1, 1]} : vector<8x96xf32> to vector<8x32xf32>
    %333 = vector.extract_strided_slice %315 {offsets = [0, 64], sizes = [8, 32], strides = [1, 1]} : vector<8x96xf32> to vector<8x32xf32>
    %334 = arith.mulf %323, %333 : vector<8x32xf32>
    %335 = arith.addf %332, %334 : vector<8x32xf32>
    %336 = math.tanh %335 : vector<8x32xf32>
    %cst_116 = arith.constant 1.000000e+00 : f32
    %337 = vector.broadcast %cst_116 : f32 to vector<8x32xf32>
    %338 = arith.subf %337, %331 : vector<8x32xf32>
    %339 = arith.mulf %338, %336 : vector<8x32xf32>
    %340 = arith.mulf %331, %298 : vector<8x32xf32>
    %341 = arith.addf %339, %340 : vector<8x32xf32>
    %c7_117 = arith.constant 7 : index
    %c0_118 = arith.constant 0 : index
    %c0_119 = arith.constant 0 : index
    %342 = vector.load %arg9[%c7_117, %c0_118, %c0_119] : memref<8x8x32xf32, #tpu.memory_space<vmem>>, vector<1x8x32xf32>
    %343 = vector.shape_cast %342 : vector<1x8x32xf32> to vector<8x32xf32>
    %344 = vector.shape_cast %341 : vector<8x32xf32> to vector<1x8x32xf32>
    tpu.vector_store %arg9[%c7_117, %c0_118, %c0_119], %344 {strides = array<i32>} : memref<8x8x32xf32, #tpu.memory_space<vmem>>, vector<1x8x32xf32>,
    %cst_120 = arith.constant dense<0.000000e+00> : vector<8x32xf32>
    %345 = tpu.matmul %341, %4, %cst_120 {dimension_numbers = #tpu.dot_dimension_numbers<[1], [0], [0], [1], [0, 0, 1, 1], [], []>} : vector<8x32xf32>, vector<32x32xf32>, vector<8x32xf32> -> vector<8x32xf32>
    %346 = vector.broadcast %5 : vector<1x32xf32> to vector<8x32xf32>
    %347 = arith.addf %345, %346 : vector<8x32xf32>
    %c7_121 = arith.constant 7 : index
    %c0_122 = arith.constant 0 : index
    %c0_123 = arith.constant 0 : index
    %348 = vector.load %arg10[%c7_121, %c0_122, %c0_123] : memref<8x8x32xf32, #tpu.memory_space<vmem>>, vector<1x8x32xf32>
    %349 = vector.shape_cast %348 : vector<1x8x32xf32> to vector<8x32xf32>
    %350 = vector.shape_cast %347 : vector<8x32xf32> to vector<1x8x32xf32>
    tpu.vector_store %arg10[%c7_121, %c0_122, %c0_123], %350 {strides = array<i32>} : memref<8x8x32xf32, #tpu.memory_space<vmem>>, vector<1x8x32xf32>,
    %c0_124 = arith.constant 0 : index
    %c0_125 = arith.constant 0 : index
    %351 = vector.load %arg5[%c0_124, %c0_125] : memref<32x32xf32, #tpu.memory_space<vmem>>, vector<32x32xf32>
    %cst_126 = arith.constant dense<0.000000e+00> : vector<8x32xf32>
    %352 = tpu.matmul %341, %351, %cst_126 {dimension_numbers = #tpu.dot_dimension_numbers<[1], [0], [0], [1], [0, 0, 1, 1], [], []>} : vector<8x32xf32>, vector<32x32xf32>, vector<8x32xf32> -> vector<8x32xf32>
    %c0_127 = arith.constant 0 : index
    %c0_128 = arith.constant 0 : index
    %353 = vector.load %arg6[%c0_127, %c0_128] : memref<1x32xf32, #tpu.memory_space<vmem>>, vector<1x32xf32>
    %354 = vector.broadcast %353 : vector<1x32xf32> to vector<8x32xf32>
    %355 = arith.addf %352, %354 : vector<8x32xf32>
    %356 = math.tanh %355 : vector<8x32xf32>
    %c0_129 = arith.constant 0 : index
    %c0_130 = arith.constant 0 : index
    %357 = vector.load %arg11[%c0_129, %c0_130] : memref<8x32xf32, #tpu.memory_space<vmem>>, vector<8x32xf32>
    tpu.vector_store %arg11[%c0_129, %c0_130], %356 {strides = array<i32>} : memref<8x32xf32, #tpu.memory_space<vmem>>, vector<8x32xf32>,
    return
  }
}

module attributes {stable_mosaic.version = 11 : i64} {
  func.func @decoder_kernel(%arg0: i32, %arg1: memref<5xi32, #tpu.memory_space<smem>>, %arg2: memref<1x8x16xf32, #tpu.memory_space<vmem>>, %arg3: memref<8x32xf32, #tpu.memory_space<vmem>>, %arg4: memref<8x8x32xf32, #tpu.memory_space<vmem>>, %arg5: memref<8x8x32xf32, #tpu.memory_space<vmem>>, %arg6: memref<32x32xf32, #tpu.memory_space<vmem>>, %arg7: memref<1x32xf32, #tpu.memory_space<vmem>>, %arg8: memref<16x96xf32, #tpu.memory_space<vmem>>, %arg9: memref<32x96xf32, #tpu.memory_space<vmem>>, %arg10: memref<32x96xf32, #tpu.memory_space<vmem>>, %arg11: memref<1x96xf32, #tpu.memory_space<vmem>>, %arg12: memref<1x96xf32, #tpu.memory_space<vmem>>, %arg13: memref<32x128xf32, #tpu.memory_space<vmem>>, %arg14: memref<32x128xf32, #tpu.memory_space<vmem>>, %arg15: memref<16x128xf32, #tpu.memory_space<vmem>>, %arg16: memref<1x128xf32, #tpu.memory_space<vmem>>, %arg17: memref<128x16xf32, #tpu.memory_space<vmem>>, %arg18: memref<1x8x128xf32, #tpu.memory_space<vmem>>, %arg19: memref<8x32xf32, #tpu.memory_space<vmem>>, %arg20: memref<8x16xf32, #tpu.memory_space<vmem>>) attributes {dimension_semantics = [#tpu.dimension_semantics<arbitrary>], iteration_bounds = array<i64: 5>, scalar_prefetch = 1 : i64, scratch_operands = 2 : i64, tpu.core_type = #tpu.core_type<tc>, window_params = [{transform_indices = @transform_0, window_bounds = array<i64: 1, 8, 16>}, {pipeline_mode = #tpu.pipeline_mode<synchronous>, transform_indices = @transform_1, window_bounds = array<i64: 8, 32>}, {pipeline_mode = #tpu.pipeline_mode<synchronous>, transform_indices = @transform_2, window_bounds = array<i64: 8, 8, 32>}, {pipeline_mode = #tpu.pipeline_mode<synchronous>, transform_indices = @transform_3, window_bounds = array<i64: 8, 8, 32>}, {pipeline_mode = #tpu.pipeline_mode<synchronous>, transform_indices = @transform_4, window_bounds = array<i64: 32, 32>}, {pipeline_mode = #tpu.pipeline_mode<synchronous>, transform_indices = @transform_5, window_bounds = array<i64: 1, 32>}, {pipeline_mode = #tpu.pipeline_mode<synchronous>, transform_indices = @transform_6, window_bounds = array<i64: 16, 96>}, {pipeline_mode = #tpu.pipeline_mode<synchronous>, transform_indices = @transform_7, window_bounds = array<i64: 32, 96>}, {pipeline_mode = #tpu.pipeline_mode<synchronous>, transform_indices = @transform_8, window_bounds = array<i64: 32, 96>}, {pipeline_mode = #tpu.pipeline_mode<synchronous>, transform_indices = @transform_9, window_bounds = array<i64: 1, 96>}, {pipeline_mode = #tpu.pipeline_mode<synchronous>, transform_indices = @transform_10, window_bounds = array<i64: 1, 96>}, {pipeline_mode = #tpu.pipeline_mode<synchronous>, transform_indices = @transform_11, window_bounds = array<i64: 32, 128>}, {pipeline_mode = #tpu.pipeline_mode<synchronous>, transform_indices = @transform_12, window_bounds = array<i64: 32, 128>}, {pipeline_mode = #tpu.pipeline_mode<synchronous>, transform_indices = @transform_13, window_bounds = array<i64: 16, 128>}, {pipeline_mode = #tpu.pipeline_mode<synchronous>, transform_indices = @transform_14, window_bounds = array<i64: 1, 128>}, {pipeline_mode = #tpu.pipeline_mode<synchronous>, transform_indices = @transform_15, window_bounds = array<i64: 128, 16>}, {transform_indices = @transform_16, window_bounds = array<i64: 1, 8, 128>}]} {
    %c0_i32 = arith.constant 0 : i32
    %0 = arith.cmpi eq, %arg0, %c0_i32 : i32
    %1 = arith.extui %0 : i1 to i32
    %c0_i32_0 = arith.constant 0 : i32
    %2 = arith.cmpi ne, %1, %c0_i32_0 : i32
    scf.if %2 {
      %c0_63 = arith.constant 0 : index
      %c0_64 = arith.constant 0 : index
      %116 = vector.load %arg3[%c0_63, %c0_64] : memref<8x32xf32, #tpu.memory_space<vmem>>, vector<8x32xf32>
      %c0_65 = arith.constant 0 : index
      %c0_66 = arith.constant 0 : index
      %117 = vector.load %arg19[%c0_65, %c0_66] : memref<8x32xf32, #tpu.memory_space<vmem>>, vector<8x32xf32>
      tpu.vector_store %arg19[%c0_65, %c0_66], %116 {strides = array<i32>} : memref<8x32xf32, #tpu.memory_space<vmem>>, vector<8x32xf32>,
      %cst_67 = arith.constant 0.000000e+00 : f32
      %118 = vector.broadcast %cst_67 : f32 to vector<8x16xf32>
      %c0_68 = arith.constant 0 : index
      %c0_69 = arith.constant 0 : index
      %119 = vector.load %arg20[%c0_68, %c0_69] : memref<8x16xf32, #tpu.memory_space<vmem>>, vector<8x16xf32>
      tpu.vector_store %arg20[%c0_68, %c0_69], %118 {strides = array<i32>} : memref<8x16xf32, #tpu.memory_space<vmem>>, vector<8x16xf32>,
    } else {
    }
    %3 = arith.index_cast %arg0 : i32 to index
    %4 = memref.load %arg1[%3] : memref<5xi32, #tpu.memory_space<smem>>
    %c0_i32_1 = arith.constant 0 : i32
    %5 = arith.cmpi sgt, %4, %c0_i32_1 : i32
    %6 = arith.extui %5 : i1 to i32
    %7 = arith.sitofp %6 : i32 to f32
    %c0 = arith.constant 0 : index
    %c0_2 = arith.constant 0 : index
    %c0_3 = arith.constant 0 : index
    %8 = vector.load %arg2[%c0, %c0_2, %c0_3] : memref<1x8x16xf32, #tpu.memory_space<vmem>>, vector<1x8x16xf32>
    %9 = vector.shape_cast %8 : vector<1x8x16xf32> to vector<8x16xf32>
    %10 = vector.broadcast %7 : f32 to vector<8x16xf32>
    %11 = arith.mulf %10, %9 : vector<8x16xf32>
    %cst = arith.constant 1.000000e+00 : f32
    %12 = arith.subf %cst, %7 : f32
    %c0_4 = arith.constant 0 : index
    %c0_5 = arith.constant 0 : index
    %13 = vector.load %arg20[%c0_4, %c0_5] : memref<8x16xf32, #tpu.memory_space<vmem>>, vector<8x16xf32>
    %14 = vector.broadcast %12 : f32 to vector<8x16xf32>
    %15 = arith.mulf %14, %13 : vector<8x16xf32>
    %16 = arith.addf %11, %15 : vector<8x16xf32>
    %c0_6 = arith.constant 0 : index
    %c0_7 = arith.constant 0 : index
    %17 = vector.load %arg19[%c0_6, %c0_7] : memref<8x32xf32, #tpu.memory_space<vmem>>, vector<8x32xf32>
    %c0_8 = arith.constant 0 : index
    %c0_9 = arith.constant 0 : index
    %18 = vector.load %arg6[%c0_8, %c0_9] : memref<32x32xf32, #tpu.memory_space<vmem>>, vector<32x32xf32>
    %cst_10 = arith.constant dense<0.000000e+00> : vector<8x32xf32>
    %19 = tpu.matmul %17, %18, %cst_10 {dimension_numbers = #tpu.dot_dimension_numbers<[1], [0], [0], [1], [0, 0, 1, 1], [], []>} : vector<8x32xf32>, vector<32x32xf32>, vector<8x32xf32> -> vector<8x32xf32>
    %c0_11 = arith.constant 0 : index
    %c0_12 = arith.constant 0 : index
    %c0_13 = arith.constant 0 : index
    %20 = vector.load %arg5[%c0_11, %c0_12, %c0_13] : memref<8x8x32xf32, #tpu.memory_space<vmem>>, vector<8x8x32xf32>
    %21 = vector.shape_cast %19 : vector<8x32xf32> to vector<8x1x32xf32>
    %22 = vector.broadcast %21 : vector<8x1x32xf32> to vector<8x8x32xf32>
    %23 = arith.addf %20, %22 : vector<8x8x32xf32>
    %24 = math.tanh %23 : vector<8x8x32xf32>
    %c0_14 = arith.constant 0 : index
    %c0_15 = arith.constant 0 : index
    %25 = vector.load %arg7[%c0_14, %c0_15] : memref<1x32xf32, #tpu.memory_space<vmem>>, vector<1x32xf32>
    %26 = vector.shape_cast %25 : vector<1x32xf32> to vector<1x1x32xf32>
    %27 = vector.broadcast %26 : vector<1x1x32xf32> to vector<8x8x32xf32>
    %28 = arith.mulf %24, %27 : vector<8x8x32xf32>
    %cst_16 = arith.constant dense<0.000000e+00> : vector<8x8xf32>
    %29 = vector.multi_reduction <add>, %28, %cst_16 [2] : vector<8x8x32xf32> to vector<8x8xf32>
    %cst_17 = arith.constant dense<0xFF800000> : vector<8xf32>
    %30 = vector.multi_reduction <maximumf>, %29, %cst_17 [1] : vector<8x8xf32> to vector<8xf32>
    %31 = vector.shape_cast %30 : vector<8xf32> to vector<8x1xf32>
    %32 = vector.broadcast %31 : vector<8x1xf32> to vector<8x8xf32>
    %33 = arith.subf %29, %32 : vector<8x8xf32>
    %34 = math.exp %33 : vector<8x8xf32>
    %cst_18 = arith.constant dense<0.000000e+00> : vector<8xf32>
    %35 = vector.multi_reduction <add>, %34, %cst_18 [1] : vector<8x8xf32> to vector<8xf32>
    %36 = vector.shape_cast %35 : vector<8xf32> to vector<8x1xf32>
    %37 = tpu.reciprocal %36 {approx = true} : vector<8x1xf32> -> vector<8x1xf32>
    %38 = vector.broadcast %37 : vector<8x1xf32> to vector<8x8xf32>
    %39 = arith.mulf %34, %38 : vector<8x8xf32>
    %40 = vector.shape_cast %39 : vector<8x8xf32> to vector<8x8x1xf32>
    %c0_19 = arith.constant 0 : index
    %c0_20 = arith.constant 0 : index
    %c0_21 = arith.constant 0 : index
    %41 = vector.load %arg4[%c0_19, %c0_20, %c0_21] : memref<8x8x32xf32, #tpu.memory_space<vmem>>, vector<8x8x32xf32>
    %42 = vector.broadcast %40 : vector<8x8x1xf32> to vector<8x8x32xf32>
    %43 = arith.mulf %42, %41 : vector<8x8x32xf32>
    %cst_22 = arith.constant dense<0.000000e+00> : vector<8x32xf32>
    %44 = vector.multi_reduction <add>, %43, %cst_22 [1] : vector<8x8x32xf32> to vector<8x32xf32>
    %c0_23 = arith.constant 0 : index
    %c0_24 = arith.constant 0 : index
    %45 = vector.load %arg8[%c0_23, %c0_24] : memref<16x96xf32, #tpu.memory_space<vmem>>, vector<16x96xf32>
    %cst_25 = arith.constant dense<0.000000e+00> : vector<8x96xf32>
    %46 = tpu.matmul %16, %45, %cst_25 {dimension_numbers = #tpu.dot_dimension_numbers<[1], [0], [0], [1], [0, 0, 1, 1], [], []>} : vector<8x16xf32>, vector<16x96xf32>, vector<8x96xf32> -> vector<8x96xf32>
    %c0_26 = arith.constant 0 : index
    %c0_27 = arith.constant 0 : index
    %47 = vector.load %arg9[%c0_26, %c0_27] : memref<32x96xf32, #tpu.memory_space<vmem>>, vector<32x96xf32>
    %cst_28 = arith.constant dense<0.000000e+00> : vector<8x96xf32>
    %48 = tpu.matmul %44, %47, %cst_28 {dimension_numbers = #tpu.dot_dimension_numbers<[1], [0], [0], [1], [0, 0, 1, 1], [], []>} : vector<8x32xf32>, vector<32x96xf32>, vector<8x96xf32> -> vector<8x96xf32>
    %49 = arith.addf %46, %48 : vector<8x96xf32>
    %c0_29 = arith.constant 0 : index
    %c0_30 = arith.constant 0 : index
    %50 = vector.load %arg11[%c0_29, %c0_30] : memref<1x96xf32, #tpu.memory_space<vmem>>, vector<1x96xf32>
    %51 = vector.broadcast %50 : vector<1x96xf32> to vector<8x96xf32>
    %52 = arith.addf %49, %51 : vector<8x96xf32>
    %c0_31 = arith.constant 0 : index
    %c0_32 = arith.constant 0 : index
    %53 = vector.load %arg10[%c0_31, %c0_32] : memref<32x96xf32, #tpu.memory_space<vmem>>, vector<32x96xf32>
    %cst_33 = arith.constant dense<0.000000e+00> : vector<8x96xf32>
    %54 = tpu.matmul %17, %53, %cst_33 {dimension_numbers = #tpu.dot_dimension_numbers<[1], [0], [0], [1], [0, 0, 1, 1], [], []>} : vector<8x32xf32>, vector<32x96xf32>, vector<8x96xf32> -> vector<8x96xf32>
    %c0_34 = arith.constant 0 : index
    %c0_35 = arith.constant 0 : index
    %55 = vector.load %arg12[%c0_34, %c0_35] : memref<1x96xf32, #tpu.memory_space<vmem>>, vector<1x96xf32>
    %56 = vector.broadcast %55 : vector<1x96xf32> to vector<8x96xf32>
    %57 = arith.addf %54, %56 : vector<8x96xf32>
    %58 = vector.extract_strided_slice %52 {offsets = [0, 0], sizes = [8, 32], strides = [1, 1]} : vector<8x96xf32> to vector<8x32xf32>
    %59 = vector.extract_strided_slice %57 {offsets = [0, 0], sizes = [8, 32], strides = [1, 1]} : vector<8x96xf32> to vector<8x32xf32>
    %60 = arith.addf %58, %59 : vector<8x32xf32>
    %61 = arith.negf %60 : vector<8x32xf32>
    %62 = math.exp %61 : vector<8x32xf32>
    %cst_36 = arith.constant 1.000000e+00 : f32
    %63 = vector.broadcast %cst_36 : f32 to vector<8x32xf32>
    %64 = arith.addf %63, %62 : vector<8x32xf32>
    %65 = arith.divf %63, %64 : vector<8x32xf32>
    %66 = vector.extract_strided_slice %52 {offsets = [0, 32], sizes = [8, 32], strides = [1, 1]} : vector<8x96xf32> to vector<8x32xf32>
    %67 = vector.extract_strided_slice %57 {offsets = [0, 32], sizes = [8, 32], strides = [1, 1]} : vector<8x96xf32> to vector<8x32xf32>
    %68 = arith.addf %66, %67 : vector<8x32xf32>
    %69 = arith.negf %68 : vector<8x32xf32>
    %70 = math.exp %69 : vector<8x32xf32>
    %cst_37 = arith.constant 1.000000e+00 : f32
    %71 = vector.broadcast %cst_37 : f32 to vector<8x32xf32>
    %72 = arith.addf %71, %70 : vector<8x32xf32>
    %73 = arith.divf %71, %72 : vector<8x32xf32>
    %74 = vector.extract_strided_slice %52 {offsets = [0, 64], sizes = [8, 32], strides = [1, 1]} : vector<8x96xf32> to vector<8x32xf32>
    %75 = vector.extract_strided_slice %57 {offsets = [0, 64], sizes = [8, 32], strides = [1, 1]} : vector<8x96xf32> to vector<8x32xf32>
    %76 = arith.mulf %65, %75 : vector<8x32xf32>
    %77 = arith.addf %74, %76 : vector<8x32xf32>
    %78 = math.tanh %77 : vector<8x32xf32>
    %cst_38 = arith.constant 1.000000e+00 : f32
    %79 = vector.broadcast %cst_38 : f32 to vector<8x32xf32>
    %80 = arith.subf %79, %73 : vector<8x32xf32>
    %81 = arith.mulf %80, %78 : vector<8x32xf32>
    %82 = arith.mulf %73, %17 : vector<8x32xf32>
    %83 = arith.addf %81, %82 : vector<8x32xf32>
    %c0_39 = arith.constant 0 : index
    %c0_40 = arith.constant 0 : index
    %84 = vector.load %arg19[%c0_39, %c0_40] : memref<8x32xf32, #tpu.memory_space<vmem>>, vector<8x32xf32>
    tpu.vector_store %arg19[%c0_39, %c0_40], %83 {strides = array<i32>} : memref<8x32xf32, #tpu.memory_space<vmem>>, vector<8x32xf32>,
    %c0_41 = arith.constant 0 : index
    %c0_42 = arith.constant 0 : index
    %85 = vector.load %arg13[%c0_41, %c0_42] : memref<32x128xf32, #tpu.memory_space<vmem>>, vector<32x128xf32>
    %cst_43 = arith.constant dense<0.000000e+00> : vector<8x128xf32>
    %86 = tpu.matmul %83, %85, %cst_43 {dimension_numbers = #tpu.dot_dimension_numbers<[1], [0], [0], [1], [0, 0, 1, 1], [], []>} : vector<8x32xf32>, vector<32x128xf32>, vector<8x128xf32> -> vector<8x128xf32>
    %c0_44 = arith.constant 0 : index
    %c0_45 = arith.constant 0 : index
    %87 = vector.load %arg14[%c0_44, %c0_45] : memref<32x128xf32, #tpu.memory_space<vmem>>, vector<32x128xf32>
    %cst_46 = arith.constant dense<0.000000e+00> : vector<8x128xf32>
    %88 = tpu.matmul %44, %87, %cst_46 {dimension_numbers = #tpu.dot_dimension_numbers<[1], [0], [0], [1], [0, 0, 1, 1], [], []>} : vector<8x32xf32>, vector<32x128xf32>, vector<8x128xf32> -> vector<8x128xf32>
    %89 = arith.addf %86, %88 : vector<8x128xf32>
    %c0_47 = arith.constant 0 : index
    %c0_48 = arith.constant 0 : index
    %90 = vector.load %arg15[%c0_47, %c0_48] : memref<16x128xf32, #tpu.memory_space<vmem>>, vector<16x128xf32>
    %cst_49 = arith.constant dense<0.000000e+00> : vector<8x128xf32>
    %91 = tpu.matmul %16, %90, %cst_49 {dimension_numbers = #tpu.dot_dimension_numbers<[1], [0], [0], [1], [0, 0, 1, 1], [], []>} : vector<8x16xf32>, vector<16x128xf32>, vector<8x128xf32> -> vector<8x128xf32>
    %92 = arith.addf %89, %91 : vector<8x128xf32>
    %c0_50 = arith.constant 0 : index
    %c0_51 = arith.constant 0 : index
    %93 = vector.load %arg16[%c0_50, %c0_51] : memref<1x128xf32, #tpu.memory_space<vmem>>, vector<1x128xf32>
    %94 = vector.broadcast %93 : vector<1x128xf32> to vector<8x128xf32>
    %95 = arith.addf %92, %94 : vector<8x128xf32>
    %c0_52 = arith.constant 0 : index
    %c0_53 = arith.constant 0 : index
    %c0_54 = arith.constant 0 : index
    %96 = vector.load %arg18[%c0_52, %c0_53, %c0_54] : memref<1x8x128xf32, #tpu.memory_space<vmem>>, vector<1x8x128xf32>
    %97 = vector.shape_cast %96 : vector<1x8x128xf32> to vector<8x128xf32>
    %98 = vector.shape_cast %95 : vector<8x128xf32> to vector<1x8x128xf32>
    tpu.vector_store %arg18[%c0_52, %c0_53, %c0_54], %98 {strides = array<i32>} : memref<1x8x128xf32, #tpu.memory_space<vmem>>, vector<1x8x128xf32>,
    %99 = tpu.iota {dimensions = array<i32: 1>} : vector<8x128xi32>
    %100 = arith.sitofp %99 : vector<8x128xi32> to vector<8x128xf32>
    %cst_55 = arith.constant dense<0xFF800000> : vector<8xf32>
    %101 = vector.multi_reduction <maximumf>, %95, %cst_55 [1] : vector<8x128xf32> to vector<8xf32>
    %102 = vector.shape_cast %101 : vector<8xf32> to vector<8x1xf32>
    %103 = vector.broadcast %102 : vector<8x1xf32> to vector<8x128xf32>
    %104 = arith.cmpf oeq, %95, %103 : vector<8x128xf32>
    %cst_56 = arith.constant 1.280000e+02 : f32
    %105 = vector.broadcast %cst_56 : f32 to vector<8x128xf32>
    %106 = arith.select %104, %100, %105 : vector<8x128xi1>, vector<8x128xf32>
    %cst_57 = arith.constant dense<0x7F800000> : vector<8xf32>
    %107 = vector.multi_reduction <minimumf>, %106, %cst_57 [1] : vector<8x128xf32> to vector<8xf32>
    %108 = vector.shape_cast %107 : vector<8xf32> to vector<8x1xf32>
    %109 = vector.broadcast %108 : vector<8x1xf32> to vector<8x128xf32>
    %110 = arith.cmpf oeq, %100, %109 : vector<8x128xf32>
    %111 = arith.extui %110 : vector<8x128xi1> to vector<8x128xi32>
    %112 = arith.sitofp %111 : vector<8x128xi32> to vector<8x128xf32>
    %c0_58 = arith.constant 0 : index
    %c0_59 = arith.constant 0 : index
    %113 = vector.load %arg17[%c0_58, %c0_59] : memref<128x16xf32, #tpu.memory_space<vmem>>, vector<128x16xf32>
    %cst_60 = arith.constant dense<0.000000e+00> : vector<8x16xf32>
    %114 = tpu.matmul %112, %113, %cst_60 {dimension_numbers = #tpu.dot_dimension_numbers<[1], [0], [0], [1], [0, 0, 1, 1], [], []>} : vector<8x128xf32>, vector<128x16xf32>, vector<8x16xf32> -> vector<8x16xf32>
    %c0_61 = arith.constant 0 : index
    %c0_62 = arith.constant 0 : index
    %115 = vector.load %arg20[%c0_61, %c0_62] : memref<8x16xf32, #tpu.memory_space<vmem>>, vector<8x16xf32>
    tpu.vector_store %arg20[%c0_61, %c0_62], %114 {strides = array<i32>} : memref<8x16xf32, #tpu.memory_space<vmem>>, vector<8x16xf32>,
    return
  }
  func.func @transform_0(%arg0: i32, %arg1: memref<5xi32, #tpu.memory_space<smem>>) -> (i32, i32, i32) {
    %c0_i32 = arith.constant 0 : i32
    %c0_i32_0 = arith.constant 0 : i32
    %c0_i32_1 = arith.constant 0 : i32
    return %arg0, %c0_i32, %c0_i32_0 : i32, i32, i32
  }
  func.func @transform_1(%arg0: i32, %arg1: memref<5xi32, #tpu.memory_space<smem>>) -> (i32, i32) {
    %c0_i32 = arith.constant 0 : i32
    %c0_i32_0 = arith.constant 0 : i32
    %c0_i32_1 = arith.constant 0 : i32
    return %c0_i32, %c0_i32_0 : i32, i32
  }
  func.func @transform_2(%arg0: i32, %arg1: memref<5xi32, #tpu.memory_space<smem>>) -> (i32, i32, i32) {
    %c0_i32 = arith.constant 0 : i32
    %c0_i32_0 = arith.constant 0 : i32
    %c0_i32_1 = arith.constant 0 : i32
    %c0_i32_2 = arith.constant 0 : i32
    return %c0_i32, %c0_i32_0, %c0_i32_1 : i32, i32, i32
  }
  func.func @transform_3(%arg0: i32, %arg1: memref<5xi32, #tpu.memory_space<smem>>) -> (i32, i32, i32) {
    %c0_i32 = arith.constant 0 : i32
    %c0_i32_0 = arith.constant 0 : i32
    %c0_i32_1 = arith.constant 0 : i32
    %c0_i32_2 = arith.constant 0 : i32
    return %c0_i32, %c0_i32_0, %c0_i32_1 : i32, i32, i32
  }
  func.func @transform_4(%arg0: i32, %arg1: memref<5xi32, #tpu.memory_space<smem>>) -> (i32, i32) {
    %c0_i32 = arith.constant 0 : i32
    %c0_i32_0 = arith.constant 0 : i32
    %c0_i32_1 = arith.constant 0 : i32
    return %c0_i32, %c0_i32_0 : i32, i32
  }
  func.func @transform_5(%arg0: i32, %arg1: memref<5xi32, #tpu.memory_space<smem>>) -> (i32, i32) {
    %c0_i32 = arith.constant 0 : i32
    %c0_i32_0 = arith.constant 0 : i32
    %c0_i32_1 = arith.constant 0 : i32
    return %c0_i32, %c0_i32_0 : i32, i32
  }
  func.func @transform_6(%arg0: i32, %arg1: memref<5xi32, #tpu.memory_space<smem>>) -> (i32, i32) {
    %c0_i32 = arith.constant 0 : i32
    %c0_i32_0 = arith.constant 0 : i32
    %c0_i32_1 = arith.constant 0 : i32
    return %c0_i32, %c0_i32_0 : i32, i32
  }
  func.func @transform_7(%arg0: i32, %arg1: memref<5xi32, #tpu.memory_space<smem>>) -> (i32, i32) {
    %c0_i32 = arith.constant 0 : i32
    %c0_i32_0 = arith.constant 0 : i32
    %c0_i32_1 = arith.constant 0 : i32
    return %c0_i32, %c0_i32_0 : i32, i32
  }
  func.func @transform_8(%arg0: i32, %arg1: memref<5xi32, #tpu.memory_space<smem>>) -> (i32, i32) {
    %c0_i32 = arith.constant 0 : i32
    %c0_i32_0 = arith.constant 0 : i32
    %c0_i32_1 = arith.constant 0 : i32
    return %c0_i32, %c0_i32_0 : i32, i32
  }
  func.func @transform_9(%arg0: i32, %arg1: memref<5xi32, #tpu.memory_space<smem>>) -> (i32, i32) {
    %c0_i32 = arith.constant 0 : i32
    %c0_i32_0 = arith.constant 0 : i32
    %c0_i32_1 = arith.constant 0 : i32
    return %c0_i32, %c0_i32_0 : i32, i32
  }
  func.func @transform_10(%arg0: i32, %arg1: memref<5xi32, #tpu.memory_space<smem>>) -> (i32, i32) {
    %c0_i32 = arith.constant 0 : i32
    %c0_i32_0 = arith.constant 0 : i32
    %c0_i32_1 = arith.constant 0 : i32
    return %c0_i32, %c0_i32_0 : i32, i32
  }
  func.func @transform_11(%arg0: i32, %arg1: memref<5xi32, #tpu.memory_space<smem>>) -> (i32, i32) {
    %c0_i32 = arith.constant 0 : i32
    %c0_i32_0 = arith.constant 0 : i32
    %c0_i32_1 = arith.constant 0 : i32
    return %c0_i32, %c0_i32_0 : i32, i32
  }
  func.func @transform_12(%arg0: i32, %arg1: memref<5xi32, #tpu.memory_space<smem>>) -> (i32, i32) {
    %c0_i32 = arith.constant 0 : i32
    %c0_i32_0 = arith.constant 0 : i32
    %c0_i32_1 = arith.constant 0 : i32
    return %c0_i32, %c0_i32_0 : i32, i32
  }
  func.func @transform_13(%arg0: i32, %arg1: memref<5xi32, #tpu.memory_space<smem>>) -> (i32, i32) {
    %c0_i32 = arith.constant 0 : i32
    %c0_i32_0 = arith.constant 0 : i32
    %c0_i32_1 = arith.constant 0 : i32
    return %c0_i32, %c0_i32_0 : i32, i32
  }
  func.func @transform_14(%arg0: i32, %arg1: memref<5xi32, #tpu.memory_space<smem>>) -> (i32, i32) {
    %c0_i32 = arith.constant 0 : i32
    %c0_i32_0 = arith.constant 0 : i32
    %c0_i32_1 = arith.constant 0 : i32
    return %c0_i32, %c0_i32_0 : i32, i32
  }
  func.func @transform_15(%arg0: i32, %arg1: memref<5xi32, #tpu.memory_space<smem>>) -> (i32, i32) {
    %c0_i32 = arith.constant 0 : i32
    %c0_i32_0 = arith.constant 0 : i32
    %c0_i32_1 = arith.constant 0 : i32
    return %c0_i32, %c0_i32_0 : i32, i32
  }
  func.func @transform_16(%arg0: i32, %arg1: memref<5xi32, #tpu.memory_space<smem>>) -> (i32, i32, i32) {
    %c0_i32 = arith.constant 0 : i32
    %c0_i32_0 = arith.constant 0 : i32
    %c0_i32_1 = arith.constant 0 : i32
    return %arg0, %c0_i32, %c0_i32_0 : i32, i32, i32
  }
}

</mosaic_0001>

<bundles_post_ra>
// kernel: _forward_device.3
= control target key start
LH: loop header
LB: loop body
LE: loop exit
PB: predicated region body
PF: predicated region fallthrough
CT: control target
= control target key end

     0   :  { %s1357_s27 = smov [#allocation5]   ;;  %s1779_s0 = inlined_call_operand.vmem [shape: s32[5], index: 0, kind: input, shape index: {}]   ;;  %s1780_s1 = inlined_call_operand.vmem [shape: f32[5,8,16], index: 1, kind: input, shape index: {}]   ;;  %s1781_s2 = inlined_call_operand.vmem [shape: f32[8,32], index: 2, kind: input, shape index: {}]   ;;  %s1782_s3 = inlined_call_operand.vmem [shape: f32[8,8,32], index: 3, kind: input, shape index: {}]   ;;  %s1783_s4 = inlined_call_operand.vmem [shape: f32[8,8,32], index: 4, kind: input, shape index: {}]   ;;  %s1784_s5 = inlined_call_operand.vmem [shape: f32[32,32], index: 5, kind: input, shape index: {}]   ;;  %s1785_s6 = inlined_call_operand.vmem [shape: f32[1,32], index: 6, kind: input, shape index: {}]   ;;  %s1786_s7 = inlined_call_operand.vmem [shape: f32[16,96], index: 7, kind: input, shape index: {}]   ;;  %s1787_s8 = inlined_call_operand.vmem [shape: f32[32,96], index: 8, kind: input, shape index: {}]   ;;  %s1788_s9 = inlined_call_operand.vmem [shape: f32[32,96], index: 9, kind: input, shape index: {}]   ;;  %s1789_s10 = inlined_call_operand.vmem [shape: f32[1,96], index: 10, kind: input, shape index: {}]   ;;  %s1790_s11 = inlined_call_operand.vmem [shape: f32[1,96], index: 11, kind: input, shape index: {}]   ;;  %s1791_s12 = inlined_call_operand.vmem [shape: f32[32,128], index: 12, kind: input, shape index: {}]   ;;  %s1792_s13 = inlined_call_operand.vmem [shape: f32[32,128], index: 13, kind: input, shape index: {}]   ;;  %s1793_s14 = inlined_call_operand.vmem [shape: f32[16,128], index: 14, kind: input, shape index: {}]   ;;  %s1794_s15 = inlined_call_operand.vmem [shape: f32[1,128], index: 15, kind: input, shape index: {}]   ;;  %s1795_s16 = inlined_call_operand.vmem [shape: f32[128,16], index: 16, kind: input, shape index: {}]   ;;  %s1796_s17 = inlined_call_operand.vmem [shape: f32[5,8,128], index: 17, kind: output, shape index: {}]  }
   0x1   :  { %1797 = sst [smem:[#allocation7_spill]] %s1779_s0 }
   0x2   :  { %1798 = sst [smem:[#allocation8_spill]] %s1780_s1 }
   0x3   :  { %1799 = sst [smem:[#allocation9_spill]] %s1789_s10 }
   0x4   :  { %s1800_s26 = sld [smem:[#allocation7_spill]] }
   0xa   :  { %s23_s10 = sshll.u32 %s1800_s26, 4  ;;  %s24_s10 = int_to_ptr.vmem [resolvable:$true] %s23_s10 }
   0xb   :  { %26 = dma.vmem_to_smem %s24_s10, 16, %s1357_s27, [#allocation4] }
   0xc   :  { %1351 = dma.done.wait [#allocation4], 16 }
   0xd   :  { %1352 = vsyncadd [#allocation4], 4294967280 }
   0xe   :  { %29 = sfence }
   0xf   :  { %s1457_s28 = smov 0  }
  0x10 LB: > { %s1463_s29 = sadd.s32 4294967295, %s1355_s28   ;;  %p1257_p0 = scmp.ge.s32.totalorder %s1355_s28, 1  ;;  %s1355_s28 = sphi %s1457_s28, %s35_s28  }
  0x11   : > { %p470_p1 = scmp.lt.s32.totalorder %s1355_s28, 6 }
  0x13   : > { %p471_p2 = pnand %p1257_p0, %p470_p1 }
  0x14   : > { %p518_p3 = scmp.lt.s32.totalorder (!%p471_p2), %s1463_s29, 4  ;;  %s1801_s19 = sld [smem:[#allocation8_spill]] (!%p471_p2) }
  0x15   : > { %474 = sbr.rel (%p471_p2) target bundleno = 1891 (0x763), region = 84  ;;  %p1260_p4 = scmp.ne.s32.totalorder (!%p471_p2), %s1463_s29, 0 }
  0x1a   : > { %s519_s10 = scalar_select %p518_p3, %s1463_s29, 4 }
  0x1b   : > { %529 = sbr.rel (%p1260_p4) target bundleno = 35 (0x23), region = 88 }
  0x1c   : > { %s1258_s0 = sshll.u32 %s519_s10, 3 }
  0x1d   : > { %s1472_s1 = scalar_lea.vmem %s1801_s19, %s1258_s0  ;;  %s1477_s22 = scalar_lea.vmem %s1796_s17, %s1258_s0 }
  0x20   : > { %v530_v0 = vld [vmem:[%s1781_s2] sm:$0xff]  ;;  %vm531_vm0 = vcmask 261120   ;;  %vm533_vm1 = vcmask 130048   ;;  %v1358_v1 = vmov 0.0  }
  0x21   : > { %532 = vst.msk [vmem:[#allocation2] sm:$0xff] %vm531_vm0, %v530_v0 }
  0x22   : > { %534 = vst.msk [vmem:[#allocation3] sm:$0xff] %vm533_vm1, %v1358_v1 }
  0x23 PF: > { %v551_v2 = vld [vmem:[%s1784_s5 + $0x18] sm:$0xff]  ;;  %v550_v3 = vld [vmem:[%s1784_s5 + $0x10] sm:$0xff]  ;;  %v549_v4 = vld [vmem:[%s1784_s5 + $0x8] sm:$0xff]  ;;  %vm552_vm2 = vcmask 261120   ;;  %v668_v1 = vlaneseq  ;;  %vm678_vm3 = vcmask 1041409   ;;  %vm680_vm4 = vcmask 1042434  }
  0x24   : > { %568 = vmatpush.msra.mxu0 %v551_v2  ;;  %v548_v5 = vld [vmem:[%s1784_s5] sm:$0xff]  ;;  %v578_v14 = vld [vmem:[%s1783_s4 + $0x10] sm:$0xff]  ;;  %v577_v15 = vld [vmem:[%s1783_s4 + $0x8] sm:$0xff]  ;;  %vm682_vm5 = vcmask 1043459   ;;  %vm684_vm6 = vcmask 1044484   ;;  %vm686_vm7 = vcmask 1045509  }
  0x25   : > { %v576_v8 = vld [vmem:[%s1783_s4] sm:$0xff]  ;;  %v581_v22 = vld [vmem:[%s1783_s4 + $0x28] sm:$0xff]  ;;  %v579_v29 = vld [vmem:[%s1783_s4 + $0x18] sm:$0xff]  ;;  %vm688_vm8 = vcmask 1046534   ;;  %vm690_vm9 = vcmask 1047559   ;;  %vm693_vm10 = vcmask 64512  }
  0x26   : > { %569 = vmatpush.msra.mxu0 %v550_v3  ;;  %v580_v13 = vld [vmem:[%s1783_s4 + $0x20] sm:$0xff]  ;;  %v582_v35 = vld [vmem:[%s1783_s4 + $0x30] sm:$0xff]  ;;  %v583_v41 = vld [vmem:[%s1783_s4 + $0x38] sm:$0xff]  ;;  %s535_s27 = sld [smem:[#allocation5 + %s1463_s29]]  ;;  %vm970_vm11 = vcmask 130048   ;;  %s1361_s23 = smov 64  }
  0x27   : > { %v1291_v31 = vld [vmem:[%s1785_s6] ss:$0 sm:$0xff]  ;;  %s1362_s26 = smov 96  }
  0x28   : > { %570 = vmatpush.msra.mxu0 %v549_v4  ;;  %v1495_v6 = vld [vmem:[#allocation2] sm:$0xff]  ;;  %v1534_v4 = vand.u32 127, %v668_v1 }
  0x2a   : > { %571 = vmatpush.msra.mxu0 %v548_v5 }
  0x2b   : > { %1261 = vmatmul.msk.f32.vlgmr.msra.gmra.mxu0 %vm552_vm2, %v1495_v6 }
  0x2c   : > { %p536_p5 = scmp.gt.s32.totalorder %s535_s27, 0 }
  0x2e   : > { %s537_s10 = scalar_select %p536_p5, 1, 0 }
  0x30   : > { %s538_s0 = scvt.s32.f32 %s537_s10 }
  0x32   : > { %s542_s30 = ssub.f32 1.0, %s538_s0 }
  0xa8   : > { %v573_v7 = vpop.f32.mrf.mxu0 }
  0xa9   : > { %v592_v9 = vperm.slane %v573_v7, 0  ;;  %v588_v10 = vrot.slane %v573_v7, 4  ;;  %v586_v11 = vrot.slane %v573_v7, 2  ;;  %v585_v12 = vrot.slane %v573_v7, 1 }
  0xaa   : > { %v589_v16 = vrot.slane %v573_v7, 5  ;;  %v587_v17 = vrot.slane %v573_v7, 3  ;;  %v590_v25 = vrot.slane %v573_v7, 6  ;;  %v591_v33 = vrot.slane %v573_v7, 7 }
  0xab   : > { %v608_v18 = vadd.f32 %v592_v9, %v576_v8  ;;  %v596_v19 = vperm.slane %v588_v10, 0  ;;  %v594_v20 = vperm.slane %v586_v11, 0  ;;  %v593_v21 = vperm.slane %v585_v12, 0 }
  0xac   : > { %v597_v23 = vperm.slane %v589_v16, 0  ;;  %v595_v24 = vperm.slane %v587_v17, 0  ;;  %v598_v34 = vperm.slane %v590_v25, 0  ;;  %v599_v38 = vperm.slane %v591_v33, 0 }
  0xad   : > { %1295 = vtanh.f32 %v608_v18  ;;  %v612_v26 = vadd.f32 %v596_v19, %v580_v13  ;;  %v610_v27 = vadd.f32 %v594_v20, %v578_v14  ;;  %v609_v28 = vadd.f32 %v593_v21, %v577_v15 }
  0xae   : > { %v613_v30 = vadd.f32 %v597_v23, %v581_v22  ;;  %v611_v32 = vadd.f32 %v595_v24, %v579_v29  ;;  %v614_v40 = vadd.f32 %v598_v34, %v582_v35  ;;  %v615_v48 = vadd.f32 %v599_v38, %v583_v41 }
  0xaf   : > { %1297 = vtanh.f32 %v612_v26 }
  0xb0   : > { %1299 = vtanh.f32 %v610_v27  ;;  %v1359_v27 = vmov 0  }
  0xb1   : > { %1301 = vtanh.f32 %v609_v28  ;;  %1290 = vset.pattern.permute.xlu2 %v1359_v27  ;;  %1289 = vset.pattern.permute.xlu1 %v1359_v27 }
  0xb2   : > { %1303 = vtanh.f32 %v613_v30  ;;  %1288 = vset.pattern.permute.xlu0 %v1359_v27  ;;  %v540_v27 = vstv %s538_s0  ;;  %s1360_s0 = smov 32  }
  0xb3   : > { %v1296_v36 = vpop.eup %1295  ;;  %1305 = vtanh.f32 %v611_v32 }
  0xb4   : > { %v628_v37 = vmul.f32 %v1296_v36, %v1291_v31  ;;  %1307 = vtanh.f32 %v614_v40 }
  0xb5   : > { %v1298_v39 = vpop.eup %1297  ;;  %1309 = vtanh.f32 %v615_v48 }
  0xb6   : > { %v1300_v42 = vpop.eup %1299  ;;  %v636_v43 = vsel %vm552_vm2, %v628_v37, 0.0  ;;  %v632_v44 = vmul.f32 %v1298_v39, %v1291_v31 }
  0xb7   : > { %v1302_v45 = vpop.eup %1301  ;;  %637 = vadd.xlane.f32.xlu0 %v636_v43  ;;  %v630_v46 = vmul.f32 %v1300_v42, %v1291_v31 }
  0xb8   : > { %v648_v47 = vsel %vm552_vm2, %v632_v44, 0.0  ;;  %v1304_v49 = vpop.eup %1303  ;;  %v629_v52 = vmul.f32 %v1302_v45, %v1291_v31 }
  0xb9   : > { %649 = vadd.xlane.f32.xlu2 %v648_v47  ;;  %v642_v50 = vsel %vm552_vm2, %v630_v46, 0.0  ;;  %v1306_v51 = vpop.eup %1305  ;;  %v633_v53 = vmul.f32 %v1304_v49, %v1291_v31 }
  0xba   : > { %643 = vadd.xlane.f32.xlu1 %v642_v50  ;;  %v631_v54 = vmul.f32 %v1306_v51, %v1291_v31  ;;  %v639_v55 = vsel %vm552_vm2, %v629_v52, 0.0  ;;  %v1308_v56 = vpop.eup %1307 }
  0xbb   : > { %v651_v57 = vsel %vm552_vm2, %v633_v53, 0.0  ;;  %v1310_v59 = vpop.eup %1309  ;;  %v634_v60 = vmul.f32 %v1308_v56, %v1291_v31 }
  0xbc   : > { %v645_v58 = vsel %vm552_vm2, %v631_v54, 0.0  ;;  %v635_v61 = vmul.f32 %v1310_v59, %v1291_v31 }
  0xbd   : > { %v654_v62 = vsel %vm552_vm2, %v634_v60, 0.0 }
  0xbe   : > { %v657_v63 = vsel %vm552_vm2, %v635_v61, 0.0 }
  0xbf   : > { %640 = vadd.xlane.f32.xlu0 %v639_v55 }
  0xc1   : > { %652 = vadd.xlane.f32.xlu2 %v651_v57 }
  0xc2   : > { %646 = vadd.xlane.f32.xlu1 %v645_v58 }
  0xc7   : > { %655 = vadd.xlane.f32.xlu0 %v654_v62 }
  0xca   : > { %658 = vadd.xlane.f32.xlu1 %v657_v63 }
 0x12a   : > { %v638_v0 = vpop.xlane.xlu0 %637 }
 0x12b   : > { %v670_v7 = vperm.slane %v638_v0, %v1534_v4 }
 0x12c   : > { %v650_v2 = vpop.xlane.xlu2 %649 }
 0x12d   : > { %v644_v3 = vpop.xlane.xlu1 %643  ;;  %v674_v14 = vperm.slane %v650_v2, %v1534_v4 }
 0x12e   : > { %v672_v9 = vperm.slane %v644_v3, %v1534_v4 }
 0x132   : > { %v641_v5 = vpop.xlane.xlu0 %640 }
 0x133   : > { %v671_v8 = vperm.slane %v641_v5, %v1534_v4 }
 0x134   : > { %v653_v15 = vpop.xlane.xlu2 %652 }
 0x135   : > { %v679_v10 = vsel %vm678_vm3, %v671_v8, %v670_v7  ;;  %v647_v11 = vpop.xlane.xlu1 %646  ;;  %v675_v18 = vperm.slane %v653_v15, %v1534_v4 }
 0x136   : > { %v673_v12 = vperm.slane %v647_v11, %v1534_v4  ;;  %v681_v13 = vsel %vm680_vm4, %v672_v9, %v679_v10 }
 0x138   : > { %v683_v16 = vsel %vm682_vm5, %v673_v12, %v681_v13 }
 0x139   : > { %v685_v17 = vsel %vm684_vm6, %v674_v14, %v683_v16 }
 0x13a   : > { %v656_v19 = vpop.xlane.xlu0 %655  ;;  %v687_v21 = vsel %vm686_vm7, %v675_v18, %v685_v17 }
 0x13b   : > { %v676_v20 = vperm.slane %v656_v19, %v1534_v4 }
 0x13d   : > { %v659_v22 = vpop.xlane.xlu1 %658  ;;  %v689_v23 = vsel %vm688_vm8, %v676_v20, %v687_v21 }
 0x13e   : > { %v677_v24 = vperm.slane %v659_v22, %v1534_v4 }
 0x140   : > { %v691_v25 = vsel %vm690_vm9, %v677_v24, %v689_v23  ;;  %v928_v24 = vld [vmem:[%s1786_s7 + $0x8] sm:$0xff] }
 0x141   : > { %v694_v26 = vsel %vm693_vm10, %v691_v25, -inf  ;;  %v927_v25 = vld [vmem:[%s1786_s7] sm:$0xff]  ;;  %988 = vmatpush.msra.mxu2 %v928_v24  ;;  %v820_v24 = vld [vmem:[%s1782_s3 + $0x28] sm:$0xff] }
 0x142   : > { %695 = vmax.xlane.f32.xlu2 %v694_v26  ;;  %v539_v26 = vld [vmem:[%s1472_s1] sm:$0xff]  ;;  %s1802_s1 = sld [smem:[#allocation9_spill]] }
 0x143   : > { %989 = vmatpush.msra.mxu2 %v927_v25  ;;  %v819_v25 = vld [vmem:[%s1782_s3 + $0x20] sm:$0xff] }
 0x1b5   : > { %v696_v28 = vpop.xlane.xlu2 %695 }
 0x1b6   : > { %v700_v29 = vperm.slane %v696_v28, 2  ;;  %v699_v30 = vperm.slane %v696_v28, 1  ;;  %v698_v31 = vperm.slane %v696_v28, 0  ;;  %v701_v35 = vperm.slane %v696_v28, 3 }
 0x1b7   : > { %v702_v36 = vperm.slane %v696_v28, 4  ;;  %v705_v37 = vperm.slane %v696_v28, 7  ;;  %v703_v45 = vperm.slane %v696_v28, 5  ;;  %v704_v47 = vperm.slane %v696_v28, 6  ;;  %v543_v28 = vld [vmem:[#allocation3] sm:$0xff] }
 0x1b8   : > { %v716_v32 = vsub.f32 %v644_v3, %v700_v29  ;;  %v715_v33 = vsub.f32 %v641_v5, %v699_v30  ;;  %v714_v34 = vsub.f32 %v638_v0, %v698_v31  ;;  %v717_v41 = vsub.f32 %v647_v11, %v701_v35  ;;  %v1002_v30 = vld [vmem:[%s1788_s9 + $0x18] sm:$0xff] }
 0x1b9   : > { %v718_v42 = vsub.f32 %v650_v2, %v702_v36  ;;  %v721_v43 = vsub.f32 %v659_v22, %v705_v37  ;;  %v719_v52 = vsub.f32 %v653_v15, %v703_v45  ;;  %v720_v53 = vsub.f32 %v656_v19, %v704_v47  ;;  %1019 = vmatpush.msrb.mxu2 %v1002_v30 }
 0x1ba   : > { %v726_v38 = vmul.f32 1.442695, %v716_v32  ;;  %v724_v39 = vmul.f32 1.442695, %v715_v33  ;;  %v722_v40 = vmul.f32 1.442695, %v714_v34  ;;  %v544_v29 = vstv %s542_s30 }
 0x1bb   : > { %v728_v44 = vmul.f32 1.442695, %v717_v41  ;;  %v730_v46 = vmul.f32 1.442695, %v718_v42  ;;  %v736_v49 = vmul.f32 1.442695, %v721_v43  ;;  %v541_v35 = vmul.f32 %v540_v27, %v539_v26 }
 0x1bc   : > { %1311 = vpow2.f32 %v726_v38  ;;  %v732_v54 = vmul.f32 1.442695, %v719_v52  ;;  %v734_v55 = vmul.f32 1.442695, %v720_v53  ;;  %v1001_v32 = vld [vmem:[%s1788_s9 + $0x10] sm:$0xff]  ;;  %v545_v36 = vmul.f32 %v544_v29, %v543_v28  ;;  %v999_v41 = vld [vmem:[%s1788_s9] sm:$0xff] }
 0x1bd   : > { %1313 = vpow2.f32 %v724_v39  ;;  %1020 = vmatpush.msrb.mxu2 %v1001_v32  ;;  %v1000_v39 = vld [vmem:[%s1788_s9 + $0x8] sm:$0xff] }
 0x1be   : > { %1315 = vpow2.f32 %v722_v40  ;;  %v1611_v40 = vadd.f32 %v545_v36, %v541_v35 }
 0x1bf   : > { %1317 = vpow2.f32 %v728_v44  ;;  %1021 = vmatpush.msrb.mxu2 %v1000_v39 }
 0x1c0   : > { %1319 = vpow2.f32 %v730_v46  ;;  %1263 = vmatmul.msk.f32.vlgmr.msra.gmra.mxu2 %vm970_vm11, %v1611_v40 }
 0x1c1   : > { %1321 = vpow2.f32 %v736_v49  ;;  %1022 = vmatpush.msrb.mxu2 %v999_v41 }
 0x1c2   : > { %v1552_v48 = vpop.eup %1311  ;;  %1323 = vpow2.f32 %v732_v54 }
 0x1c3   : > { %v1554_v50 = vpop.eup %1313  ;;  %753 = vperm.xlu2 %1290, %v1552_v48   ;;  %1325 = vpow2.f32 %v734_v55  ;;  %v815_v55 = vld [vmem:[%s1782_s3] sm:$0xff] }
 0x1c4   : > { %v1557_v51 = vpop.eup %1315  ;;  %750 = vperm.xlu1 %1289, %v1554_v50  }
 0x1c5   : > { %747 = vperm.xlu0 %1288, %v1557_v51   ;;  %v1561_v56 = vpop.eup %1317 }
 0x1c6   : > { %v1563_v57 = vpop.eup %1319 }
 0x1c7   : > { %v1566_v58 = vpop.eup %1321 }
 0x1c8   : > { %v1570_v59 = vpop.eup %1323  ;;  %1264 = vmatmul.msk.f32.vlgmr.msrb.gmra.mxu2 %vm552_vm2, %v1495_v6 }
 0x1c9   : > { %v1572_v60 = vpop.eup %1325 }
 0x1cb   : > { %756 = vperm.xlu2 %1290, %v1561_v56  }
 0x1cc   : > { %759 = vperm.xlu1 %1289, %v1563_v57  }
 0x1cd   : > { %768 = vperm.xlu0 %1288, %v1566_v58  }
 0x1d3   : > { %762 = vperm.xlu2 %1290, %v1570_v59  }
 0x1d4   : > { %765 = vperm.xlu1 %1289, %v1572_v60  }
 0x21d   : > { %v754_v61 = vpop.permute.xlu2 %753 }
 0x21e   : > { %v772_v7 = vperm.slane %v754_v61, %v1534_v4 }
 0x225   : > { %v757_v0 = vpop.permute.xlu2 %756 }
 0x226   : > { %v773_v10 = vperm.slane %v757_v0, %v1534_v4 }
 0x22d   : > { %v763_v11 = vpop.permute.xlu2 %762 }
 0x22e   : > { %v775_v15 = vperm.slane %v763_v11, %v1534_v4 }
 0x236   : > { %v751_v62 = vpop.permute.xlu1 %750 }
 0x237   : > { %v748_v63 = vpop.permute.xlu0 %747  ;;  %v771_v1 = vperm.slane %v751_v62, %v1534_v4  ;;  %v817_v62 = vld [vmem:[%s1782_s3 + $0x10] sm:$0xff] }
 0x238   : > { %v770_v2 = vperm.slane %v748_v63, %v1534_v4 }
 0x23a   : > { %v778_v3 = vsel %vm678_vm3, %v771_v1, %v770_v2  ;;  %v932_v1 = vld [vmem:[%s1787_s8 + $0x18] sm:$0xff] }
 0x23b   : > { %v779_v8 = vsel %vm680_vm4, %v772_v7, %v778_v3  ;;  %v1081_v2 = vld [vmem:[%s1792_s13 + $0x18] sm:$0xff]  ;;  %v931_v3 = vld [vmem:[%s1787_s8 + $0x10] sm:$0xff]  ;;  %962 = vmatpush.msra.mxu1 %v932_v1 }
 0x23c   : > { %v780_v12 = vsel %vm682_vm5, %v773_v10, %v779_v8  ;;  %1094 = vmatpush.msra.mxu2 %v1081_v2  ;;  %v1079_v10 = vld [vmem:[%s1792_s13 + $0x8] sm:$0xff] }
 0x23d   : > { %963 = vmatpush.msra.mxu1 %v931_v3 }
 0x23e   : > { %v760_v5 = vpop.permute.xlu1 %759 }
 0x23f   : > { %v774_v9 = vperm.slane %v760_v5, %v1534_v4  ;;  %v769_v14 = vpop.permute.xlu0 %768  ;;  %v1080_v5 = vld [vmem:[%s1792_s13 + $0x10] sm:$0xff] }
 0x240   : > { %v777_v18 = vperm.slane %v769_v14, %v1534_v4  ;;  %1095 = vmatpush.msra.mxu2 %v1080_v5 }
 0x241   : > { %v781_v13 = vsel %vm684_vm6, %v774_v9, %v780_v12  ;;  %v930_v9 = vld [vmem:[%s1787_s8 + $0x8] sm:$0xff] }
 0x242   : > { %v782_v19 = vsel %vm686_vm7, %v775_v15, %v781_v13  ;;  %v929_v15 = vld [vmem:[%s1787_s8] sm:$0xff]  ;;  %964 = vmatpush.msra.mxu1 %v930_v9  ;;  %1096 = vmatpush.msra.mxu2 %v1079_v10 }
 0x244   : > { %965 = vmatpush.msra.mxu1 %v929_v15 }
 0x246   : > { %v766_v16 = vpop.permute.xlu1 %765 }
 0x247   : > { %v776_v17 = vperm.slane %v766_v16, %v1534_v4  ;;  %v1078_v16 = vld [vmem:[%s1792_s13] sm:$0xff] }
 0x248   : > { %1097 = vmatpush.msra.mxu2 %v1078_v16 }
 0x249   : > { %v783_v20 = vsel %vm688_vm8, %v776_v17, %v782_v19 }
 0x24a   : > { %v784_v21 = vsel %vm690_vm9, %v777_v18, %v783_v20 }
 0x24b   : > { %v786_v22 = vsel %vm693_vm10, %v784_v21, 0.0 }
 0x24c   : > { %787 = vadd.xlane.f32.xlu2 %v786_v22 }
 0x264   : > { %1064 = vrot.lane.b32.xlu2 %v1495_v6, %s1360_s0  ;;  %v818_v6 = vld [vmem:[%s1782_s3 + $0x18] sm:$0xff] }
 0x2bf   : > { %v788_v23 = vpop.xlane.xlu2 %787 }
 0x2c0   : > { %1327 = vrcp.f32 %v788_v23 }
 0x2c6   : > { %v1328_v31 = vpop.eup %1327 }
 0x2c7   : > { %v792_v33 = vperm.slane %v1328_v31, 1  ;;  %v791_v34 = vperm.slane %v1328_v31, 0  ;;  %v794_v42 = vperm.slane %v1328_v31, 3  ;;  %v793_v43 = vperm.slane %v1328_v31, 2 }
 0x2c8   : > { %v796_v46 = vperm.slane %v1328_v31, 5  ;;  %v795_v47 = vperm.slane %v1328_v31, 4  ;;  %v797_v52 = vperm.slane %v1328_v31, 6 }
 0x2c9   : > { %v808_v37 = vmul.f32 %v1554_v50, %v792_v33  ;;  %v807_v38 = vmul.f32 %v1557_v51, %v791_v34  ;;  %v810_v44 = vmul.f32 %v1561_v56, %v794_v42  ;;  %v809_v45 = vmul.f32 %v1552_v48, %v793_v43  ;;  %v816_v48 = vld [vmem:[%s1782_s3 + $0x8] sm:$0xff] }
 0x2ca   : > { %v812_v49 = vmul.f32 %v1570_v59, %v796_v46  ;;  %v811_v50 = vmul.f32 %v1563_v57, %v795_v47  ;;  %v798_v51 = vperm.slane %v1328_v31, 7  ;;  %v813_v54 = vmul.f32 %v1572_v60, %v797_v52  ;;  %v822_v46 = vld [vmem:[%s1782_s3 + $0x38] sm:$0xff]  ;;  %v821_v47 = vld [vmem:[%s1782_s3 + $0x30] sm:$0xff] }
 0x2cb   : > { %830 = vperm.xlu0 %1288, %v808_v37   ;;  %825 = vperm.xlu1 %1289, %v807_v38   ;;  %v991_v37 = vpop.f32.mrf.mxu2 }
 0x2cc   : > { %v814_v53 = vmul.f32 %v1566_v58, %v798_v51 }
 0x2d3   : > { %840 = vperm.xlu0 %1288, %v810_v44   ;;  %835 = vperm.xlu1 %1289, %v809_v45  }
 0x2db   : > { %850 = vperm.xlu0 %1288, %v812_v49   ;;  %845 = vperm.xlu1 %1289, %v811_v50  }
 0x2e3   : > { %860 = vperm.xlu0 %1288, %v814_v53   ;;  %855 = vperm.xlu1 %1289, %v813_v54  }
 0x33d   : > { %v831_v56 = vpop.permute.xlu0 %830  ;;  %v826_v57 = vpop.permute.xlu1 %825 }
 0x33e   : > { %v864_v59 = vmul.f32 %v831_v56, %v816_v48  ;;  %v863_v61 = vmul.f32 %v826_v57, %v815_v55  ;;  %v1292_v56 = vld [vmem:[%s1790_s11] ss:$0 sm:$0xff] }
 0x340   : > { %v878_v58 = vsel %vm552_vm2, %v864_v59, 0.0  ;;  %v871_v60 = vsel %vm552_vm2, %v863_v61, 0.0 }
 0x341   : > { %v879_v63 = vrot.slane %v878_v58, 4  ;;  %v872_v0 = vrot.slane %v871_v60, 4 }
 0x343   : > { %v880_v13 = vadd.f32 %v879_v63, %v878_v58  ;;  %v873_v14 = vadd.f32 %v872_v0, %v871_v60  ;;  %v1024_v63 = vpop.f32.mrf.mxu2 }
 0x344   : > { %v1025_v5 = vadd.f32 %v1292_v56, %v1024_v63  ;;  %v1075_v56 = vld [vmem:[%s1791_s12 + $0x8] sm:$0xff] }
 0x345   : > { %v841_v7 = vpop.permute.xlu0 %840  ;;  %v836_v8 = vpop.permute.xlu1 %835  ;;  %v881_v21 = vrot.slane %v880_v13, 2  ;;  %v874_v22 = vrot.slane %v873_v14, 2 }
 0x346   : > { %v866_v11 = vmul.f32 %v841_v7, %v818_v6  ;;  %v865_v12 = vmul.f32 %v836_v8, %v817_v62  ;;  %1048 = vrot.lane.b32.xlu1 %v1025_v5, %s1361_s23 }
 0x347   : > { %v882_v32 = vadd.f32 %v881_v21, %v880_v13  ;;  %v875_v33 = vadd.f32 %v874_v22, %v873_v14 }
 0x348   : > { %v892_v17 = vsel %vm552_vm2, %v866_v11, 0.0  ;;  %v885_v18 = vsel %vm552_vm2, %v865_v12, 0.0 }
 0x349   : > { %v893_v19 = vrot.slane %v892_v17, 4  ;;  %v886_v20 = vrot.slane %v885_v18, 4  ;;  %v883_v42 = vrot.slane %v882_v32, 1  ;;  %v876_v43 = vrot.slane %v875_v33, 1 }
 0x34b   : > { %v887_v23 = vadd.f32 %v886_v20, %v885_v18  ;;  %v894_v26 = vadd.f32 %v893_v19, %v892_v17  ;;  %v884_v57 = vadd.f32 %v883_v42, %v882_v32  ;;  %v877_v59 = vadd.f32 %v876_v43, %v875_v33 }
 0x34d   : > { %v888_v27 = vrot.slane %v887_v23, 2  ;;  %v851_v28 = vpop.permute.xlu0 %850  ;;  %v846_v29 = vpop.permute.xlu1 %845  ;;  %v895_v34 = vrot.slane %v894_v26, 2  ;;  %v941_v9 = vsel %vm678_vm3, %v884_v57, %v877_v59  ;;  %v1074_v57 = vld [vmem:[%s1791_s12] sm:$0xff] }
 0x34e   : > { %v868_v30 = vmul.f32 %v851_v28, %v820_v24  ;;  %v867_v31 = vmul.f32 %v846_v29, %v819_v25  ;;  %v1293_v28 = vld [vmem:[%s1802_s1] ss:$0 sm:$0xff]  ;;  %v1065_v59 = vpop.permute.xlu2 %1064 }
 0x34f   : > { %v889_v38 = vadd.f32 %v888_v27, %v887_v23  ;;  %v896_v49 = vadd.f32 %v895_v34, %v894_v26 }
 0x350   : > { %v906_v35 = vsel %vm552_vm2, %v868_v30, 0.0  ;;  %v899_v36 = vsel %vm552_vm2, %v867_v31, 0.0 }
 0x351   : > { %v907_v39 = vrot.slane %v906_v35, 4  ;;  %v900_v41 = vrot.slane %v899_v36, 4  ;;  %v890_v50 = vrot.slane %v889_v38, 1  ;;  %v897_v58 = vrot.slane %v896_v49, 1 }
 0x353   : > { %v908_v44 = vadd.f32 %v907_v39, %v906_v35  ;;  %v901_v45 = vadd.f32 %v900_v41, %v899_v36  ;;  %v891_v0 = vadd.f32 %v890_v50, %v889_v38  ;;  %v898_v10 = vadd.f32 %v897_v58, %v896_v49 }
 0x355   : > { %v909_v51 = vrot.slane %v908_v44, 2  ;;  %v902_v52 = vrot.slane %v901_v45, 2  ;;  %v861_v53 = vpop.permute.xlu0 %860  ;;  %v856_v54 = vpop.permute.xlu1 %855  ;;  %v942_v12 = vsel %vm680_vm4, %v891_v0, %v941_v9  ;;  %v1177_v9 = vld [vmem:[%s1795_s16 + $0x70] sm:$0xff] }
 0x356   : > { %v870_v48 = vmul.f32 %v861_v53, %v822_v46  ;;  %v869_v55 = vmul.f32 %v856_v54, %v821_v47  ;;  %v943_v19 = vsel %vm682_vm5, %v898_v10, %v942_v12  ;;  %v1077_v53 = vld [vmem:[%s1791_s12 + $0x18] sm:$0xff]  ;;  %v1076_v54 = vld [vmem:[%s1791_s12 + $0x10] sm:$0xff]  ;;  %v1176_v10 = vld [vmem:[%s1795_s16 + $0x68] sm:$0xff] }
 0x357   : > { %v903_v61 = vadd.f32 %v902_v52, %v901_v45  ;;  %v910_v60 = vadd.f32 %v909_v51, %v908_v44  ;;  %1116 = vmatpush.msrb.mxu0 %v1077_v53  ;;  %v1174_v12 = vld [vmem:[%s1795_s16 + $0x58] sm:$0xff] }
 0x358   : > { %v920_v6 = vsel %vm552_vm2, %v870_v48, 0.0  ;;  %v913_v62 = vsel %vm552_vm2, %v869_v55, 0.0  ;;  %v1125_v48 = vld [vmem:[%s1793_s14 + $0x8] sm:$0xff]  ;;  %v1124_v55 = vld [vmem:[%s1793_s14] sm:$0xff] }
 0x359   : > { %v904_v1 = vrot.slane %v903_v61, 1  ;;  %v921_v2 = vrot.slane %v920_v6, 4  ;;  %v914_v3 = vrot.slane %v913_v62, 4  ;;  %v911_v11 = vrot.slane %v910_v60, 1  ;;  %1140 = vmatpush.msrb.mxu1 %v1125_v48  ;;  %1117 = vmatpush.msrb.mxu0 %v1076_v54 }
 0x35b   : > { %v922_v7 = vadd.f32 %v921_v2, %v920_v6  ;;  %v915_v8 = vadd.f32 %v914_v3, %v913_v62  ;;  %v905_v13 = vadd.f32 %v904_v1, %v903_v61  ;;  %v912_v18 = vadd.f32 %v911_v11, %v910_v60  ;;  %1141 = vmatpush.msrb.mxu1 %v1124_v55  ;;  %v1175_v11 = vld [vmem:[%s1795_s16 + $0x60] sm:$0xff] }
 0x35c   : > { %1118 = vmatpush.msrb.mxu0 %v1075_v56 }
 0x35d   : > { %v923_v14 = vrot.slane %v922_v7, 2  ;;  %v916_v15 = vrot.slane %v915_v8, 2  ;;  %v944_v22 = vsel %vm684_vm6, %v905_v13, %v943_v19  ;;  %v1173_v13 = vld [vmem:[%s1795_s16 + $0x50] sm:$0xff]  ;;  %v1167_v19 = vld [vmem:[%s1795_s16 + $0x20] sm:$0xff] }
 0x35e   : > { %v945_v25 = vsel %vm686_vm7, %v912_v18, %v944_v22  ;;  %1119 = vmatpush.msrb.mxu0 %v1074_v57  ;;  %v1168_v18 = vld [vmem:[%s1795_s16 + $0x28] sm:$0xff] }
 0x35f   : > { %v924_v16 = vadd.f32 %v923_v14, %v922_v7  ;;  %v917_v17 = vadd.f32 %v916_v15, %v915_v8  ;;  %v1178_v8 = vld [vmem:[%s1795_s16 + $0x78] sm:$0xff]  ;;  %v1172_v14 = vld [vmem:[%s1795_s16 + $0x48] sm:$0xff]  ;;  %v1171_v15 = vld [vmem:[%s1795_s16 + $0x40] sm:$0xff] }
 0x360   : > { %1179 = vmatpush.msra.mxu3 %v1178_v8  ;;  %v1164_v22 = vld [vmem:[%s1795_s16 + $0x8] sm:$0xff] }
 0x361   : > { %v925_v20 = vrot.slane %v924_v16, 1  ;;  %v918_v21 = vrot.slane %v917_v17, 1 }
 0x362   : > { %1180 = vmatpush.msra.mxu3 %v1177_v9 }
 0x363   : > { %v919_v23 = vadd.f32 %v918_v21, %v917_v17  ;;  %v926_v24 = vadd.f32 %v925_v20, %v924_v16  ;;  %v1170_v16 = vld [vmem:[%s1795_s16 + $0x38] sm:$0xff]  ;;  %v1169_v17 = vld [vmem:[%s1795_s16 + $0x30] sm:$0xff] }
 0x364   : > { %1181 = vmatpush.msra.mxu3 %v1176_v10  ;;  %v1166_v20 = vld [vmem:[%s1795_s16 + $0x18] sm:$0xff]  ;;  %v1165_v21 = vld [vmem:[%s1795_s16 + $0x10] sm:$0xff] }
 0x365   : > { %v946_v26 = vsel %vm688_vm8, %v919_v23, %v945_v25  ;;  %v1153_v23 = vcvt.s32.f32 %v1534_v4 }
 0x366   : > { %v947_v27 = vsel %vm690_vm9, %v926_v24, %v946_v26  ;;  %1182 = vmatpush.msra.mxu3 %v1175_v11  ;;  %v1163_v26 = vld [vmem:[%s1795_s16] sm:$0xff] }
 0x367   : > { %1262 = vmatmul.msk.f32.vlgmr.msra.gmra.mxu1 %vm552_vm2, %v947_v27  ;;  %1266 = vmatmul.msk.f32.vlgmr.msra.gmra.mxu2 %vm552_vm2, %v947_v27 }
 0x368   : > { %1183 = vmatpush.msra.mxu3 %v1174_v12 }
 0x36a   : > { %1184 = vmatpush.msra.mxu3 %v1173_v13 }
 0x36c   : > { %1185 = vmatpush.msra.mxu3 %v1172_v14 }
 0x36e   : > { %1186 = vmatpush.msra.mxu3 %v1171_v15 }
 0x36f   : > { %1268 = vmatmul.msk.f32.vlgmr.msrb.gmra.mxu1 %vm970_vm11, %v1611_v40  ;;  %v1294_v40 = vld [vmem:[%s1794_s15] ss:$0 sm:$0xff] }
 0x370   : > { %1187 = vmatpush.msra.mxu3 %v1170_v16 }
 0x372   : > { %1188 = vmatpush.msra.mxu3 %v1169_v17 }
 0x374   : > { %1189 = vmatpush.msra.mxu3 %v1168_v18 }
 0x376   : > { %1190 = vmatpush.msra.mxu3 %v1167_v19 }
 0x378   : > { %1191 = vmatpush.msra.mxu3 %v1166_v20 }
 0x37a   : > { %1192 = vmatpush.msra.mxu3 %v1165_v21 }
 0x37c   : > { %1193 = vmatpush.msra.mxu3 %v1164_v22 }
 0x37e   : > { %1194 = vmatpush.msra.mxu3 %v1163_v26 }
 0x3b8   : > { %v1049_v46 = vpop.permute.xlu1 %1048 }
 0x3e4   : > { %v967_v29 = vpop.f32.mrf.mxu1 }
 0x3e5   : > { %v992_v30 = vadd.f32 %v991_v37, %v967_v29 }
 0x3e7   : > { %v998_v31 = vadd.f32 %v1293_v28, %v992_v30  ;;  %v1363_v28 = vmov 1.0  }
 0x3e9   : > { %v1027_v32 = vadd.f32 %v1025_v5, %v998_v31 }
 0x3ea   : > { %v1099_v0 = vpop.f32.mrf.mxu2 }
 0x3eb   : > { %v1265_v33 = vmul.f32 -1.442695, %v1027_v32 }
 0x3ec   : > { %v1143_v2 = vpop.f32.mrf.mxu1 }
 0x3ed   : > { %1329 = vpow2.f32 %v1265_v33 }
 0x3f3   : > { %v1330_v34 = vpop.eup %1329 }
 0x3f4   : > { %v1031_v35 = vadd.f32 1.0, %v1330_v34 }
 0x3f6   : > { %1331 = vrcp.f32 %v1031_v35  ;;  %v1043_v41 = vand.u32 2147483648, %v1031_v35  ;;  %v1041_v43 = vand.u32 2147483647, %v1031_v35  ;;  %vm1037_vm13 = vweird.f32 %v1031_v35 }
 0x3f8   : > { %v1044_v45 = vor.u32 1.1754944e-38, %v1043_v41  ;;  %vm1042_vm15 = vcmp.eq.f32.partialorder %v1041_v43, 8.507059e+37 }
 0x3fc   : > { %v1332_v36 = vpop.eup %1331 }
 0x3fd   : > { %v1033_v38 = vmul.f32 %v1332_v36, %v1031_v35  ;;  %vm1038_vm12 = vweird.f32 %v1332_v36 }
 0x3fe   : > { %vm1039_vm14 = vmor %vm1037_vm13, %vm1038_vm12 }
 0x3ff   : > { %v1034_v39 = vsub.f32 1.0, %v1033_v38 }
 0x401   : > { %v1035_v42 = vmul.f32 %v1332_v36, %v1034_v39 }
 0x403   : > { %v1036_v44 = vadd.f32 %v1332_v36, %v1035_v42 }
 0x405   : > { %v1040_v37 = vsel %vm1039_vm14, %v1332_v36, %v1036_v44 }
 0x406   : > { %v1045_v47 = vsel %vm1042_vm15, %v1044_v45, %v1040_v37 }
 0x407   : > { %v1051_v49 = vmul.f32 %v1049_v46, %v1045_v47  ;;  %v1058_v61 = vsub.f32 1.0, %v1045_v47  ;;  %v1067_v60 = vmul.f32 %v1065_v59, %v1045_v47 }
 0x409   : > { %1053 = vrot.lane.b32.xlu0 %v1051_v49, %s1361_s23 }
 0x47b   : > { %v1054_v50 = vpop.permute.xlu0 %1053 }
 0x47c   : > { %v1056_v51 = vadd.f32 %v1054_v50, %v998_v31 }
 0x47e   : > { %1333 = vtanh.f32 %v1056_v51 }
 0x484   : > { %v1334_v52 = vpop.eup %1333 }
 0x485   : > { %1060 = vrot.lane.b32.xlu1 %v1334_v52, %s1362_s26 }
 0x4f7   : > { %v1061_v58 = vpop.permute.xlu1 %1060 }
 0x4f8   : > { %v1063_v6 = vmul.f32 %v1061_v58, %v1058_v61 }
 0x4fa   : > { %v1068_v62 = vadd.f32 %v1067_v60, %v1063_v6 }
 0x4fc   : > { %1070 = vrot.lane.b32.xlu0 %v1068_v62, %s1362_s26 }
 0x56e   : > { %v1071_v63 = vpop.permute.xlu0 %1070 }
 0x56f   : > { %1073 = vst.msk [vmem:[#allocation2] sm:$0xff] %vm552_vm2, %v1071_v63  ;;  %1267 = vmatmul.msk.f32.vlgmr.msrb.gmra.mxu0 %vm552_vm2, %v1071_v63 }
 0x5ec   : > { %v1121_v1 = vpop.f32.mrf.mxu0 }
 0x5ed   : > { %v1122_v3 = vadd.f32 %v1121_v1, %v1099_v0 }
 0x5ef   : > { %v1146_v5 = vadd.f32 %v1143_v2, %v1122_v3 }
 0x5f1   : > { %v1151_v7 = vadd.f32 %v1294_v40, %v1146_v5 }
 0x5f3   : > { %1152 = vst [vmem:[%s1477_s22] sm:$0xff] %v1151_v7  ;;  %1154 = vmax.xlane.f32.xlu1 %v1151_v7 }
 0x666   : > { %v1155_v24 = vpop.xlane.xlu1 %1154 }
 0x667   : > { %vm1156_vm0 = vcmp.eq.f32.partialorder %v1151_v7, %v1155_v24 }
 0x668   : > { %v1157_v25 = vsel %vm1156_vm0, %v1153_v23, 128.0 }
 0x669   : > { %1158 = vmin.xlane.f32.xlu0 %v1157_v25 }
 0x6dc   : > { %v1159_v27 = vpop.xlane.xlu0 %1158 }
 0x6dd   : > { %vm1160_vm1 = vcmp.eq.f32.partialorder %v1153_v23, %v1159_v27 }
 0x6de   : > { %1270 = vmatmul.msk.f32.vlgmr.msra.gmra.mxu3 %vm1160_vm1, %v1363_v28 }
 0x761   : > { %v1196_v29 = vpop.f32.mrf.mxu3 }
 0x762   : > { %1199 = vst.msk [vmem:[#allocation3] sm:$0xff] %vm970_vm11, %v1196_v29 }
 0x763 PF: > { %s35_s28 = sadd.s32 1, %s1355_s28  }
 0x764   : > { %p32_p6 = scmp.ge.s32.totalorder %s35_s28, 7  }
 0x766   :  { %34 = sbr.rel (!%p32_p6) target bundleno = 16 (0x10), region = 118 }

// kernel: _forward_device.2
= control target key start
LH: loop header
LB: loop body
LE: loop exit
PB: predicated region body
PF: predicated region fallthrough
CT: control target
= control target key end

     0   :  { %vm52_vm0 = vcmask 130048   ;;  %v1123_v7 = vmov 0.0   ;;  %s1124_s12 = smov 64   ;;  %vm79_vm5 = vcmask 261120   ;;  %s1518_s2 = inlined_call_operand.vmem [shape: f32[32,96], index: 2, kind: input, shape index: {}]   ;;  %s1519_s1 = inlined_call_operand.vmem [shape: f32[16,96], index: 1, kind: input, shape index: {}]   ;;  %s1520_s0 = inlined_call_operand.vmem [shape: f32[8,8,16], index: 0, kind: input, shape index: {}]   ;;  %s1521_s3 = inlined_call_operand.vmem [shape: f32[1,96], index: 3, kind: input, shape index: {}]   ;;  %s1522_s4 = inlined_call_operand.vmem [shape: f32[1,96], index: 4, kind: input, shape index: {}]   ;;  %s1523_s7 = inlined_call_operand.vmem [shape: f32[32,32], index: 7, kind: input, shape index: {}]   ;;  %s1524_s9 = inlined_call_operand.vmem [shape: f32[8,8,32], index: 9, kind: output, shape index: {0}]   ;;  %s1525_s8 = inlined_call_operand.vmem [shape: f32[1,32], index: 8, kind: input, shape index: {}]   ;;  %s1526_s10 = inlined_call_operand.vmem [shape: f32[8,8,32], index: 10, kind: output, shape index: {1}]   ;;  %s1527_s5 = inlined_call_operand.vmem [shape: f32[32,32], index: 5, kind: input, shape index: {}]   ;;  %s1528_s6 = inlined_call_operand.vmem [shape: f32[1,32], index: 6, kind: input, shape index: {}]   ;;  %s1529_s11 = inlined_call_operand.vmem [shape: f32[8,32], index: 11, kind: output, shape index: {2}]  }
   0x1   :  { %v1189_v0 = vld [vmem:[%s1518_s2 + $0x18] sm:$0xff]  ;;  %v1194_v1 = vld [vmem:[%s1518_s2 + $0x10] sm:$0xff]  ;;  %v1199_v2 = vld [vmem:[%s1519_s1 + $0x8] sm:$0xff] }
   0x2   :  { %95 = vmatpush.msra.mxu1 %v1189_v0  ;;  %70 = vmatpush.msra.mxu0 %v1199_v2  ;;  %v1206_v3 = vld [vmem:[%s1519_s1] sm:$0xff]  ;;  %v1211_v4 = vld [vmem:[%s1518_s2 + $0x8] sm:$0xff]  ;;  %v1256_v33 = vld [vmem:[%s1523_s7 + $0x18] sm:$0xff] }
   0x3   :  { %v48_v5 = vld [vmem:[%s1520_s0] sm:$0xff]  ;;  %192 = vmatpush.msra.mxu3 %v1199_v2  ;;  %v1016_v34 = vld [vmem:[%s1520_s0 + $0x8] sm:$0xff]  ;;  %v1264_v35 = vld [vmem:[%s1523_s7 + $0x10] sm:$0xff]  ;;  %164 = vmatpush.msra.mxu2 %v1256_v33 }
   0x4   :  { %96 = vmatpush.msra.mxu1 %v1194_v1  ;;  %71 = vmatpush.msra.mxu0 %v1206_v3  ;;  %v1222_v6 = vld [vmem:[%s1518_s2] sm:$0xff]  ;;  %v1271_v36 = vld [vmem:[%s1523_s7 + $0x8] sm:$0xff] }
   0x5   :  { %1013 = vmatmul.msk.f32.vlgmr.msra.gmra.mxu0 %vm52_vm0, %v48_v5  ;;  %193 = vmatpush.msra.mxu3 %v1206_v3  ;;  %v1241_v8 = vld [vmem:[%s1522_s4] ss:$0 sm:$0xff] }
   0x6   :  { %97 = vmatpush.msra.mxu1 %v1211_v4  ;;  %210 = vmatpush.msrb.mxu0 %v1189_v0  ;;  %v1248_v11 = vld [vmem:[%s1521_s3] ss:$0 sm:$0xff]  ;;  %s1125_s3 = smov 96  }
   0x7   :  { %1017 = vmatmul.msk.f32.vlgmr.msra.gmra.mxu3 %vm52_vm0, %v1016_v34  ;;  %165 = vmatpush.msra.mxu2 %v1264_v35  ;;  %v1279_v37 = vld [vmem:[%s1523_s7] sm:$0xff] }
   0x8   :  { %98 = vmatpush.msra.mxu1 %v1222_v6  ;;  %211 = vmatpush.msrb.mxu0 %v1194_v1  ;;  %v1313_v46 = vld [vmem:[%s1525_s8] ss:$0 sm:$0xff] }
   0x9   :  { %99 = vmatmul.f32.vlgmr.msra.gmra.mxu1 %v1123_v7  ;;  %277 = vmatpush.msrb.mxu3 %v1256_v33 }
   0xa   :  { %212 = vmatpush.msrb.mxu0 %v1211_v4  ;;  %306 = vmatpush.msrb.mxu1 %v1199_v2 }
   0xb   :  { %278 = vmatpush.msrb.mxu3 %v1264_v35  ;;  %166 = vmatpush.msra.mxu2 %v1271_v36 }
   0xc   :  { %213 = vmatpush.msrb.mxu0 %v1222_v6  ;;  %307 = vmatpush.msrb.mxu1 %v1206_v3 }
   0xd   :  { %279 = vmatpush.msrb.mxu3 %v1271_v36  ;;  %167 = vmatpush.msra.mxu2 %v1279_v37 }
   0xe   :  { %438 = vmatpush.msra.mxu1 %v1189_v0  ;;  %391 = vmatpush.msra.mxu0 %v1256_v33 }
   0xf   :  { %324 = vmatpush.msrb.mxu2 %v1189_v0  ;;  %280 = vmatpush.msrb.mxu3 %v1279_v37 }
  0x10   :  { %439 = vmatpush.msra.mxu1 %v1194_v1  ;;  %392 = vmatpush.msra.mxu0 %v1264_v35 }
  0x11   :  { %420 = vmatpush.msra.mxu3 %v1199_v2  ;;  %325 = vmatpush.msrb.mxu2 %v1194_v1 }
  0x12   :  { %440 = vmatpush.msra.mxu1 %v1211_v4  ;;  %393 = vmatpush.msra.mxu0 %v1271_v36 }
  0x13   :  { %421 = vmatpush.msra.mxu3 %v1206_v3  ;;  %326 = vmatpush.msrb.mxu2 %v1211_v4 }
  0x14   :  { %441 = vmatpush.msra.mxu1 %v1222_v6  ;;  %394 = vmatpush.msra.mxu0 %v1279_v37 }
  0x15   :  { %327 = vmatpush.msrb.mxu2 %v1222_v6 }
  0x82   :  { %v73_v12 = vpop.f32.mrf.mxu0 }
  0x83   :  { %v74_v13 = vadd.f32 %v1248_v11, %v73_v12 }
  0x86   :  { %v100_v9 = vpop.f32.mrf.mxu1 }
  0x87   :  { %v101_v10 = vadd.f32 %v1241_v8, %v100_v9 }
  0x89   :  { %124 = vrot.lane.b32.xlu0 %v101_v10, %s1124_s12  ;;  %v103_v14 = vadd.f32 %v101_v10, %v74_v13 }
  0x8a   :  { %v195_v49 = vpop.f32.mrf.mxu3 }
  0x8b   :  { %v1014_v15 = vmul.f32 -1.442695, %v103_v14  ;;  %v196_v50 = vadd.f32 %v1248_v11, %v195_v49 }
  0x8d   :  { %1073 = vpow2.f32 %v1014_v15 }
  0x93   :  { %v1074_v16 = vpop.eup %1073 }
  0x94   :  { %v107_v17 = vadd.f32 1.0, %v1074_v16 }
  0x96   :  { %1075 = vrcp.f32 %v107_v17  ;;  %v119_v23 = vand.u32 2147483648, %v107_v17  ;;  %vm113_vm2 = vweird.f32 %v107_v17  ;;  %v117_v24 = vand.u32 2147483647, %v107_v17 }
  0x98   :  { %v120_v26 = vor.u32 1.1754944e-38, %v119_v23  ;;  %vm118_vm4 = vcmp.eq.f32.partialorder %v117_v24, 8.507059e+37 }
  0x9c   :  { %v1076_v18 = vpop.eup %1075 }
  0x9d   :  { %v109_v19 = vmul.f32 %v1076_v18, %v107_v17  ;;  %vm114_vm1 = vweird.f32 %v1076_v18 }
  0x9e   :  { %vm115_vm3 = vmor %vm113_vm2, %vm114_vm1 }
  0x9f   :  { %v110_v20 = vsub.f32 1.0, %v109_v19  ;;  %v1023_v19 = vld [vmem:[%s1520_s0 + $0x10] sm:$0xff] }
  0xa0   :  { %1024 = vmatmul.msk.f32.vlgmr.msrb.gmra.mxu1 %vm52_vm0, %v1023_v19 }
  0xa1   :  { %v111_v21 = vmul.f32 %v1076_v18, %v110_v20  ;;  %619 = vmatpush.msrb.mxu1 %v1256_v33 }
  0xa3   :  { %v112_v22 = vadd.f32 %v1076_v18, %v111_v21  ;;  %620 = vmatpush.msrb.mxu1 %v1264_v35 }
  0xa5   :  { %v116_v25 = vsel %vm115_vm3, %v1076_v18, %v112_v22  ;;  %621 = vmatpush.msrb.mxu1 %v1271_v36 }
  0xa6   :  { %v121_v28 = vsel %vm118_vm4, %v120_v26, %v116_v25 }
  0xa7   :  { %v134_v38 = vsub.f32 1.0, %v121_v28  ;;  %v140_v40 = vmul.f32 0.0, %v121_v28  ;;  %622 = vmatpush.msrb.mxu1 %v1279_v37 }
  0xfb   :  { %v125_v27 = vpop.permute.xlu0 %124 }
  0xfc   :  { %v127_v29 = vmul.f32 %v125_v27, %v121_v28 }
  0xfe   :  { %129 = vrot.lane.b32.xlu0 %v127_v29, %s1124_s12 }
 0x11d   :  { %v309_v25 = vpop.f32.mrf.mxu1 }
 0x11e   :  { %v310_v26 = vadd.f32 %v1248_v11, %v309_v25 }
 0x170   :  { %v130_v30 = vpop.permute.xlu0 %129 }
 0x171   :  { %v132_v31 = vadd.f32 %v130_v30, %v74_v13 }
 0x173   :  { %1077 = vtanh.f32 %v132_v31 }
 0x179   :  { %v1078_v32 = vpop.eup %1077 }
 0x17a   :  { %136 = vrot.lane.b32.xlu1 %v1078_v32, %s1125_s3 }
 0x1ec   :  { %v137_v39 = vpop.permute.xlu1 %136 }
 0x1ed   :  { %v139_v41 = vmul.f32 %v137_v39, %v134_v38 }
 0x1ef   :  { %v141_v42 = vadd.f32 %v140_v40, %v139_v41 }
 0x1f1   :  { %143 = vrot.lane.b32.xlu1 %v141_v42, %s1125_s3 }
 0x263   :  { %v144_v43 = vpop.permute.xlu1 %143 }
 0x264   :  { %146 = vst.msk [vmem:[%s1524_s9] sm:$0xff] %vm79_vm5, %v144_v43  ;;  %1015 = vmatmul.msk.f32.vlgmr.msra.gmra.mxu2 %vm79_vm5, %v144_v43  ;;  %1018 = vmatmul.msk.f32.vlgmr.msrb.gmra.mxu0 %vm79_vm5, %v144_v43 }
 0x265   :  { %505 = vmatpush.msra.mxu2 %v1256_v33  ;;  %534 = vmatpush.msrb.mxu0 %v1199_v2 }
 0x267   :  { %506 = vmatpush.msra.mxu2 %v1264_v35  ;;  %535 = vmatpush.msrb.mxu0 %v1206_v3 }
 0x269   :  { %507 = vmatpush.msra.mxu2 %v1271_v36 }
 0x26b   :  { %508 = vmatpush.msra.mxu2 %v1279_v37 }
 0x2e1   :  { %v215_v44 = vpop.f32.mrf.mxu0 }
 0x2e2   :  { %v216_v45 = vadd.f32 %v1241_v8, %v215_v44 }
 0x2e4   :  { %239 = vrot.lane.b32.xlu2 %v216_v45, %s1124_s12  ;;  %v218_v51 = vadd.f32 %v216_v45, %v196_v50 }
 0x2e6   :  { %v1019_v52 = vmul.f32 -1.442695, %v218_v51  ;;  %v1030_v51 = vld [vmem:[%s1520_s0 + $0x18] sm:$0xff] }
 0x2e7   :  { %v169_v47 = vpop.f32.mrf.mxu2 }
 0x2e8   :  { %v170_v48 = vadd.f32 %v1313_v46, %v169_v47  ;;  %1079 = vpow2.f32 %v1019_v52 }
 0x2ea   :  { %172 = vst.msk [vmem:[%s1526_s10] sm:$0xff] %vm79_vm5, %v170_v48 }
 0x2ee   :  { %v1080_v53 = vpop.eup %1079 }
 0x2ef   :  { %v222_v54 = vadd.f32 1.0, %v1080_v53 }
 0x2f1   :  { %1081 = vrcp.f32 %v222_v54  ;;  %v234_v60 = vand.u32 2147483648, %v222_v54  ;;  %vm228_vm7 = vweird.f32 %v222_v54  ;;  %v232_v61 = vand.u32 2147483647, %v222_v54 }
 0x2f3   :  { %v235_v63 = vor.u32 1.1754944e-38, %v234_v60  ;;  %vm233_vm9 = vcmp.eq.f32.partialorder %v232_v61, 8.507059e+37 }
 0x2f7   :  { %v1082_v55 = vpop.eup %1081 }
 0x2f8   :  { %v224_v56 = vmul.f32 %v1082_v55, %v222_v54  ;;  %vm229_vm6 = vweird.f32 %v1082_v55 }
 0x2f9   :  { %vm230_vm8 = vmor %vm228_vm7, %vm229_vm6 }
 0x2fa   :  { %v225_v57 = vsub.f32 1.0, %v224_v56 }
 0x2fc   :  { %v226_v58 = vmul.f32 %v1082_v55, %v225_v57 }
 0x2fe   :  { %v227_v59 = vadd.f32 %v1082_v55, %v226_v58 }
 0x300   :  { %v231_v62 = vsel %vm230_vm8, %v1082_v55, %v227_v59 }
 0x301   :  { %v236_v7 = vsel %vm233_vm9, %v235_v63, %v231_v62 }
 0x302   :  { %v249_v14 = vsub.f32 1.0, %v236_v7  ;;  %v255_v16 = vmul.f32 %v236_v7, %v141_v42 }
 0x33e   :  { %v240_v5 = vpop.permute.xlu2 %239 }
 0x33f   :  { %v242_v9 = vmul.f32 %v240_v5, %v236_v7 }
 0x341   :  { %244 = vrot.lane.b32.xlu2 %v242_v9, %s1124_s12 }
 0x39b   :  { %v245_v10 = vpop.permute.xlu2 %244 }
 0x39c   :  { %v247_v12 = vadd.f32 %v245_v10, %v196_v50 }
 0x39e   :  { %1083 = vtanh.f32 %v247_v12 }
 0x3a4   :  { %v1084_v13 = vpop.eup %1083 }
 0x3a5   :  { %251 = vrot.lane.b32.xlu0 %v1084_v13, %s1125_s3 }
 0x417   :  { %v252_v15 = vpop.permute.xlu0 %251 }
 0x418   :  { %v254_v17 = vmul.f32 %v252_v15, %v249_v14 }
 0x41a   :  { %v256_v18 = vadd.f32 %v255_v16, %v254_v17 }
 0x41c   :  { %258 = vrot.lane.b32.xlu1 %v256_v18, %s1125_s3 }
 0x48e   :  { %v259_v20 = vpop.permute.xlu1 %258 }
 0x48f   :  { %1020 = vst.msk [vmem:[%s1524_s9 + $0x8] sm:$0xff] %vm79_vm5, %v259_v20  ;;  %1021 = vmatmul.msk.f32.vlgmr.msrb.gmra.mxu3 %vm79_vm5, %v259_v20  ;;  %1025 = vmatmul.msk.f32.vlgmr.msrb.gmra.mxu2 %vm79_vm5, %v259_v20 }
 0x490   :  { %552 = vmatpush.msrb.mxu3 %v1189_v0  ;;  %648 = vmatpush.msrb.mxu2 %v1199_v2 }
 0x492   :  { %553 = vmatpush.msrb.mxu3 %v1194_v1  ;;  %649 = vmatpush.msrb.mxu2 %v1206_v3 }
 0x494   :  { %554 = vmatpush.msrb.mxu3 %v1211_v4 }
 0x496   :  { %555 = vmatpush.msrb.mxu3 %v1222_v6 }
 0x497   :  { %1031 = vmatmul.msk.f32.vlgmr.msra.gmra.mxu3 %vm52_vm0, %v1030_v51 }
 0x498   :  { %733 = vmatpush.msra.mxu3 %v1256_v33 }
 0x49a   :  { %734 = vmatpush.msra.mxu3 %v1264_v35 }
 0x49c   :  { %735 = vmatpush.msra.mxu3 %v1271_v36 }
 0x49e   :  { %736 = vmatpush.msra.mxu3 %v1279_v37 }
 0x512   :  { %v282_v21 = vpop.f32.mrf.mxu3  ;;  %v329_v22 = vpop.f32.mrf.mxu2 }
 0x513   :  { %v283_v23 = vadd.f32 %v1313_v46, %v282_v21  ;;  %v330_v24 = vadd.f32 %v1241_v8, %v329_v22 }
 0x515   :  { %1022 = vst.msk [vmem:[%s1526_s10 + $0x8] sm:$0xff] %vm79_vm5, %v283_v23  ;;  %353 = vrot.lane.b32.xlu2 %v330_v24, %s1124_s12  ;;  %v332_v27 = vadd.f32 %v330_v24, %v310_v26 }
 0x517   :  { %v1026_v28 = vmul.f32 -1.442695, %v332_v27 }
 0x519   :  { %1085 = vpow2.f32 %v1026_v28 }
 0x51a   :  { %v423_v62 = vpop.f32.mrf.mxu3 }
 0x51b   :  { %v424_v63 = vadd.f32 %v1248_v11, %v423_v62  ;;  %v1044_v62 = vld [vmem:[%s1520_s0 + $0x28] sm:$0xff] }
 0x51f   :  { %v1086_v29 = vpop.eup %1085 }
 0x520   :  { %v336_v30 = vadd.f32 1.0, %v1086_v29 }
 0x522   :  { %1087 = vrcp.f32 %v336_v30  ;;  %v348_v40 = vand.u32 2147483648, %v336_v30  ;;  %vm342_vm11 = vweird.f32 %v336_v30  ;;  %v346_v41 = vand.u32 2147483647, %v336_v30 }
 0x524   :  { %v349_v43 = vor.u32 1.1754944e-38, %v348_v40  ;;  %vm347_vm13 = vcmp.eq.f32.partialorder %v346_v41, 8.507059e+37 }
 0x528   :  { %v1088_v31 = vpop.eup %1087 }
 0x529   :  { %v338_v32 = vmul.f32 %v1088_v31, %v336_v30  ;;  %vm343_vm10 = vweird.f32 %v1088_v31 }
 0x52a   :  { %vm344_vm12 = vmor %vm342_vm11, %vm343_vm10 }
 0x52b   :  { %v339_v34 = vsub.f32 1.0, %v338_v32  ;;  %v1037_v32 = vld [vmem:[%s1520_s0 + $0x20] sm:$0xff] }
 0x52d   :  { %v340_v38 = vmul.f32 %v1088_v31, %v339_v34 }
 0x52f   :  { %v341_v39 = vadd.f32 %v1088_v31, %v340_v38 }
 0x531   :  { %v345_v42 = vsel %vm344_vm12, %v1088_v31, %v341_v39 }
 0x532   :  { %v350_v45 = vsel %vm347_vm13, %v349_v43, %v345_v42 }
 0x533   :  { %v363_v52 = vsub.f32 1.0, %v350_v45  ;;  %v369_v54 = vmul.f32 %v350_v45, %v256_v18 }
 0x56f   :  { %v354_v44 = vpop.permute.xlu2 %353 }
 0x570   :  { %v356_v47 = vmul.f32 %v354_v44, %v350_v45 }
 0x572   :  { %358 = vrot.lane.b32.xlu0 %v356_v47, %s1124_s12 }
 0x5e4   :  { %v359_v48 = vpop.permute.xlu0 %358 }
 0x5e5   :  { %v361_v49 = vadd.f32 %v359_v48, %v310_v26 }
 0x5e7   :  { %1089 = vtanh.f32 %v361_v49 }
 0x5ed   :  { %v1090_v50 = vpop.eup %1089 }
 0x5ee   :  { %365 = vrot.lane.b32.xlu1 %v1090_v50, %s1125_s3 }
 0x660   :  { %v366_v53 = vpop.permute.xlu1 %365 }
 0x661   :  { %v368_v55 = vmul.f32 %v366_v53, %v363_v52 }
 0x663   :  { %v370_v56 = vadd.f32 %v369_v54, %v368_v55 }
 0x665   :  { %372 = vrot.lane.b32.xlu2 %v370_v56, %s1125_s3 }
 0x6bf   :  { %v373_v57 = vpop.permute.xlu2 %372 }
 0x6c0   :  { %1027 = vst.msk [vmem:[%s1524_s9 + $0x10] sm:$0xff] %vm79_vm5, %v373_v57  ;;  %1028 = vmatmul.msk.f32.vlgmr.msra.gmra.mxu0 %vm79_vm5, %v373_v57  ;;  %1032 = vmatmul.msk.f32.vlgmr.msra.gmra.mxu1 %vm79_vm5, %v373_v57 }
 0x6c1   :  { %666 = vmatpush.msra.mxu0 %v1189_v0  ;;  %762 = vmatpush.msra.mxu1 %v1199_v2 }
 0x6c3   :  { %667 = vmatpush.msra.mxu0 %v1194_v1  ;;  %763 = vmatpush.msra.mxu1 %v1206_v3 }
 0x6c5   :  { %668 = vmatpush.msra.mxu0 %v1211_v4 }
 0x6c7   :  { %669 = vmatpush.msra.mxu0 %v1222_v6 }
 0x6c8   :  { %1038 = vmatmul.msk.f32.vlgmr.msrb.gmra.mxu0 %vm52_vm0, %v1037_v32 }
 0x6c9   :  { %847 = vmatpush.msrb.mxu0 %v1256_v33 }
 0x6cb   :  { %848 = vmatpush.msrb.mxu0 %v1264_v35 }
 0x6cd   :  { %849 = vmatpush.msrb.mxu0 %v1271_v36 }
 0x6cf   :  { %850 = vmatpush.msrb.mxu0 %v1279_v37 }
 0x73d   :  { %v396_v58 = vpop.f32.mrf.mxu0  ;;  %v443_v59 = vpop.f32.mrf.mxu1 }
 0x73e   :  { %v397_v60 = vadd.f32 %v1313_v46, %v396_v58  ;;  %v444_v61 = vadd.f32 %v1241_v8, %v443_v59 }
 0x740   :  { %1029 = vst.msk [vmem:[%s1526_s10 + $0x10] sm:$0xff] %vm79_vm5, %v397_v60  ;;  %467 = vrot.lane.b32.xlu0 %v444_v61, %s1124_s12  ;;  %v446_v5 = vadd.f32 %v444_v61, %v424_v63 }
 0x742   :  { %v1033_v7 = vmul.f32 -1.442695, %v446_v5 }
 0x744   :  { %1091 = vpow2.f32 %v1033_v7 }
 0x74a   :  { %v1092_v9 = vpop.eup %1091 }
 0x74b   :  { %v450_v10 = vadd.f32 1.0, %v1092_v9 }
 0x74d   :  { %1093 = vrcp.f32 %v450_v10  ;;  %v462_v17 = vand.u32 2147483648, %v450_v10  ;;  %vm456_vm15 = vweird.f32 %v450_v10  ;;  %v460_v18 = vand.u32 2147483647, %v450_v10 }
 0x74f   :  { %v463_v20 = vor.u32 1.1754944e-38, %v462_v17  ;;  %vm461_vm2 = vcmp.eq.f32.partialorder %v460_v18, 8.507059e+37 }
 0x753   :  { %v1094_v12 = vpop.eup %1093 }
 0x754   :  { %v452_v13 = vmul.f32 %v1094_v12, %v450_v10  ;;  %vm457_vm14 = vweird.f32 %v1094_v12 }
 0x755   :  { %vm458_vm1 = vmor %vm456_vm15, %vm457_vm14 }
 0x756   :  { %v453_v14 = vsub.f32 1.0, %v452_v13 }
 0x758   :  { %v454_v15 = vmul.f32 %v1094_v12, %v453_v14 }
 0x75a   :  { %v455_v16 = vadd.f32 %v1094_v12, %v454_v15 }
 0x75c   :  { %v459_v19 = vsel %vm458_vm1, %v1094_v12, %v455_v16 }
 0x75d   :  { %v464_v22 = vsel %vm461_vm2, %v463_v20, %v459_v19 }
 0x75e   :  { %v477_v27 = vsub.f32 1.0, %v464_v22  ;;  %v483_v29 = vmul.f32 %v464_v22, %v370_v56 }
 0x7b2   :  { %v468_v21 = vpop.permute.xlu0 %467 }
 0x7b3   :  { %v470_v23 = vmul.f32 %v468_v21, %v464_v22 }
 0x7b5   :  { %472 = vrot.lane.b32.xlu1 %v470_v23, %s1124_s12 }
 0x827   :  { %v473_v24 = vpop.permute.xlu1 %472 }
 0x828   :  { %v475_v25 = vadd.f32 %v473_v24, %v424_v63 }
 0x82a   :  { %1095 = vtanh.f32 %v475_v25 }
 0x830   :  { %v1096_v26 = vpop.eup %1095 }
 0x831   :  { %479 = vrot.lane.b32.xlu2 %v1096_v26, %s1125_s3 }
 0x88b   :  { %v480_v28 = vpop.permute.xlu2 %479 }
 0x88c   :  { %v482_v30 = vmul.f32 %v480_v28, %v477_v27 }
 0x88e   :  { %v484_v31 = vadd.f32 %v483_v29, %v482_v30 }
 0x890   :  { %486 = vrot.lane.b32.xlu0 %v484_v31, %s1125_s3 }
 0x902   :  { %v487_v34 = vpop.permute.xlu0 %486 }
 0x903   :  { %1034 = vst.msk [vmem:[%s1524_s9 + $0x18] sm:$0xff] %vm79_vm5, %v487_v34  ;;  %1035 = vmatmul.msk.f32.vlgmr.msra.gmra.mxu2 %vm79_vm5, %v487_v34  ;;  %1039 = vmatmul.msk.f32.vlgmr.msrb.gmra.mxu3 %vm79_vm5, %v487_v34 }
 0x904   :  { %780 = vmatpush.msra.mxu2 %v1189_v0  ;;  %876 = vmatpush.msrb.mxu3 %v1199_v2  ;;  %v537_v2 = vpop.f32.mrf.mxu0 }
 0x906   :  { %781 = vmatpush.msra.mxu2 %v1194_v1  ;;  %877 = vmatpush.msrb.mxu3 %v1206_v3  ;;  %v538_v3 = vadd.f32 %v1248_v11, %v537_v2 }
 0x908   :  { %782 = vmatpush.msra.mxu2 %v1211_v4 }
 0x90a   :  { %783 = vmatpush.msra.mxu2 %v1222_v6 }
 0x90b   :  { %1045 = vmatmul.msk.f32.vlgmr.msrb.gmra.mxu2 %vm52_vm0, %v1044_v62 }
 0x90c   :  { %961 = vmatpush.msrb.mxu2 %v1256_v33 }
 0x90e   :  { %962 = vmatpush.msrb.mxu2 %v1264_v35 }
 0x910   :  { %963 = vmatpush.msrb.mxu2 %v1271_v36 }
 0x912   :  { %964 = vmatpush.msrb.mxu2 %v1279_v37 }
 0x986   :  { %v510_v38 = vpop.f32.mrf.mxu2  ;;  %v557_v39 = vpop.f32.mrf.mxu3 }
 0x987   :  { %v511_v40 = vadd.f32 %v1313_v46, %v510_v38  ;;  %v558_v41 = vadd.f32 %v1241_v8, %v557_v39  ;;  %v1051_v39 = vld [vmem:[%s1520_s0 + $0x30] sm:$0xff] }
 0x989   :  { %1036 = vst.msk [vmem:[%s1526_s10 + $0x18] sm:$0xff] %vm79_vm5, %v511_v40  ;;  %581 = vrot.lane.b32.xlu1 %v558_v41, %s1124_s12  ;;  %v560_v42 = vadd.f32 %v558_v41, %v538_v3 }
 0x98b   :  { %v1040_v43 = vmul.f32 -1.442695, %v560_v42 }
 0x98d   :  { %1097 = vpow2.f32 %v1040_v43 }
 0x993   :  { %v1098_v44 = vpop.eup %1097 }
 0x994   :  { %v564_v45 = vadd.f32 1.0, %v1098_v44 }
 0x996   :  { %1099 = vrcp.f32 %v564_v45  ;;  %v576_v52 = vand.u32 2147483648, %v564_v45  ;;  %vm570_vm4 = vweird.f32 %v564_v45  ;;  %v574_v53 = vand.u32 2147483647, %v564_v45 }
 0x998   :  { %v577_v55 = vor.u32 1.1754944e-38, %v576_v52  ;;  %vm575_vm7 = vcmp.eq.f32.partialorder %v574_v53, 8.507059e+37 }
 0x99c   :  { %v1100_v47 = vpop.eup %1099 }
 0x99d   :  { %v566_v48 = vmul.f32 %v1100_v47, %v564_v45  ;;  %vm571_vm3 = vweird.f32 %v1100_v47 }
 0x99e   :  { %vm572_vm6 = vmor %vm570_vm4, %vm571_vm3 }
 0x99f   :  { %v567_v49 = vsub.f32 1.0, %v566_v48 }
 0x9a1   :  { %v568_v50 = vmul.f32 %v1100_v47, %v567_v49 }
 0x9a3   :  { %v569_v51 = vadd.f32 %v1100_v47, %v568_v50 }
 0x9a5   :  { %v573_v54 = vsel %vm572_vm6, %v1100_v47, %v569_v51 }
 0x9a6   :  { %v578_v57 = vsel %vm575_vm7, %v577_v55, %v573_v54 }
 0x9a7   :  { %v591_v63 = vsub.f32 1.0, %v578_v57  ;;  %v597_v7 = vmul.f32 %v578_v57, %v484_v31 }
 0x9fb   :  { %v582_v56 = vpop.permute.xlu1 %581 }
 0x9fc   :  { %v584_v58 = vmul.f32 %v582_v56, %v578_v57 }
 0x9fe   :  { %586 = vrot.lane.b32.xlu2 %v584_v58, %s1124_s12 }
 0xa58   :  { %v587_v59 = vpop.permute.xlu2 %586 }
 0xa59   :  { %v589_v60 = vadd.f32 %v587_v59, %v538_v3 }
 0xa5b   :  { %1101 = vtanh.f32 %v589_v60 }
 0xa61   :  { %v1102_v61 = vpop.eup %1101 }
 0xa62   :  { %593 = vrot.lane.b32.xlu0 %v1102_v61, %s1125_s3 }
 0xad4   :  { %v594_v5 = vpop.permute.xlu0 %593 }
 0xad5   :  { %v596_v9 = vmul.f32 %v594_v5, %v591_v63 }
 0xad7   :  { %v598_v10 = vadd.f32 %v597_v7, %v596_v9  ;;  %v1058_v7 = vld [vmem:[%s1520_s0 + $0x38] sm:$0xff] }
 0xad9   :  { %600 = vrot.lane.b32.xlu1 %v598_v10, %s1125_s3 }
 0xb4b   :  { %v601_v12 = vpop.permute.xlu1 %600 }
 0xb4c   :  { %1041 = vst.msk [vmem:[%s1524_s9 + $0x20] sm:$0xff] %vm79_vm5, %v601_v12  ;;  %1042 = vmatmul.msk.f32.vlgmr.msrb.gmra.mxu1 %vm79_vm5, %v601_v12  ;;  %1046 = vmatmul.msk.f32.vlgmr.msra.gmra.mxu0 %vm79_vm5, %v601_v12 }
 0xb4d   :  { %894 = vmatpush.msrb.mxu1 %v1189_v0  ;;  %v651_v0 = vpop.f32.mrf.mxu2 }
 0xb4f   :  { %895 = vmatpush.msrb.mxu1 %v1194_v1  ;;  %v652_v1 = vadd.f32 %v1248_v11, %v651_v0 }
 0xb51   :  { %896 = vmatpush.msrb.mxu1 %v1211_v4 }
 0xb53   :  { %897 = vmatpush.msrb.mxu1 %v1222_v6 }
 0xb54   :  { %1052 = vmatmul.msk.f32.vlgmr.msra.gmra.mxu1 %vm52_vm0, %v1051_v39 }
 0xbc9   :  { %v624_v33 = vpop.f32.mrf.mxu1  ;;  %v671_v35 = vpop.f32.mrf.mxu0 }
 0xbca   :  { %v625_v36 = vadd.f32 %v1313_v46, %v624_v33  ;;  %v672_v37 = vadd.f32 %v1241_v8, %v671_v35 }
 0xbcc   :  { %1043 = vst.msk [vmem:[%s1526_s10 + $0x20] sm:$0xff] %vm79_vm5, %v625_v36  ;;  %695 = vrot.lane.b32.xlu2 %v672_v37, %s1124_s12  ;;  %v674_v13 = vadd.f32 %v672_v37, %v652_v1 }
 0xbce   :  { %v1047_v4 = vmul.f32 -1.442695, %v674_v13 }
 0xbd0   :  { %1103 = vpow2.f32 %v1047_v4 }
 0xbd1   :  { %v765_v43 = vpop.f32.mrf.mxu1 }
 0xbd2   :  { %v766_v44 = vadd.f32 %v1248_v11, %v765_v43  ;;  %v1072_v43 = vld [vmem:[%s1528_s6] ss:$0 sm:$0xff] }
 0xbd6   :  { %v1104_v6 = vpop.eup %1103 }
 0xbd7   :  { %v678_v14 = vadd.f32 1.0, %v1104_v6 }
 0xbd9   :  { %1105 = vrcp.f32 %v678_v14  ;;  %v690_v20 = vand.u32 2147483648, %v678_v14  ;;  %vm684_vm9 = vweird.f32 %v678_v14  ;;  %v688_v21 = vand.u32 2147483647, %v678_v14 }
 0xbdb   :  { %v691_v23 = vor.u32 1.1754944e-38, %v690_v20  ;;  %vm689_vm11 = vcmp.eq.f32.partialorder %v688_v21, 8.507059e+37 }
 0xbdf   :  { %v1106_v15 = vpop.eup %1105 }
 0xbe0   :  { %v680_v16 = vmul.f32 %v1106_v15, %v678_v14  ;;  %vm685_vm8 = vweird.f32 %v1106_v15 }
 0xbe1   :  { %vm686_vm10 = vmor %vm684_vm9, %vm685_vm8 }
 0xbe2   :  { %v681_v17 = vsub.f32 1.0, %v680_v16 }
 0xbe4   :  { %v682_v18 = vmul.f32 %v1106_v15, %v681_v17 }
 0xbe6   :  { %v683_v19 = vadd.f32 %v1106_v15, %v682_v18 }
 0xbe8   :  { %v687_v22 = vsel %vm686_vm10, %v1106_v15, %v683_v19 }
 0xbe9   :  { %v692_v25 = vsel %vm689_vm11, %v691_v23, %v687_v22 }
 0xbea   :  { %v705_v30 = vsub.f32 1.0, %v692_v25  ;;  %v711_v32 = vmul.f32 %v692_v25, %v598_v10 }
 0xc26   :  { %v696_v24 = vpop.permute.xlu2 %695 }
 0xc27   :  { %v698_v26 = vmul.f32 %v696_v24, %v692_v25 }
 0xc29   :  { %700 = vrot.lane.b32.xlu0 %v698_v26, %s1124_s12 }
 0xc9b   :  { %v701_v27 = vpop.permute.xlu0 %700 }
 0xc9c   :  { %v703_v28 = vadd.f32 %v701_v27, %v652_v1 }
 0xc9e   :  { %1107 = vtanh.f32 %v703_v28 }
 0xca4   :  { %v1108_v29 = vpop.eup %1107 }
 0xca5   :  { %707 = vrot.lane.b32.xlu1 %v1108_v29, %s1125_s3 }
 0xd17   :  { %v708_v31 = vpop.permute.xlu1 %707 }
 0xd18   :  { %v710_v34 = vmul.f32 %v708_v31, %v705_v30  ;;  %v974_v31 = vld [vmem:[%s1527_s5 + $0x18] sm:$0xff] }
 0xd19   :  { %991 = vmatpush.msra.mxu0 %v974_v31 }
 0xd1a   :  { %v712_v38 = vadd.f32 %v711_v32, %v710_v34  ;;  %v973_v32 = vld [vmem:[%s1527_s5 + $0x10] sm:$0xff]  ;;  %v972_v34 = vld [vmem:[%s1527_s5 + $0x8] sm:$0xff] }
 0xd1b   :  { %992 = vmatpush.msra.mxu0 %v973_v32 }
 0xd1c   :  { %714 = vrot.lane.b32.xlu2 %v712_v38, %s1125_s3 }
 0xd1d   :  { %993 = vmatpush.msra.mxu0 %v972_v34 }
 0xd76   :  { %v715_v40 = vpop.permute.xlu2 %714 }
 0xd77   :  { %1048 = vst.msk [vmem:[%s1524_s9 + $0x28] sm:$0xff] %vm79_vm5, %v715_v40  ;;  %1049 = vmatmul.msk.f32.vlgmr.msra.gmra.mxu3 %vm79_vm5, %v715_v40  ;;  %1053 = vmatmul.msk.f32.vlgmr.msra.gmra.mxu2 %vm79_vm5, %v715_v40 }
 0xd7f   :  { %1059 = vmatmul.msk.f32.vlgmr.msrb.gmra.mxu3 %vm52_vm0, %v1058_v7 }
 0xdfa   :  { %v738_v41 = vpop.f32.mrf.mxu3  ;;  %v785_v2 = vpop.f32.mrf.mxu2 }
 0xdfb   :  { %v739_v3 = vadd.f32 %v1313_v46, %v738_v41  ;;  %v786_v42 = vadd.f32 %v1241_v8, %v785_v2 }
 0xdfd   :  { %1050 = vst.msk [vmem:[%s1526_s10 + $0x28] sm:$0xff] %vm79_vm5, %v739_v3  ;;  %809 = vrot.lane.b32.xlu0 %v786_v42, %s1124_s12  ;;  %v788_v45 = vadd.f32 %v786_v42, %v766_v44 }
 0xdff   :  { %v1054_v47 = vmul.f32 -1.442695, %v788_v45 }
 0xe01   :  { %1109 = vpow2.f32 %v1054_v47 }
 0xe02   :  { %v879_v4 = vpop.f32.mrf.mxu3 }
 0xe03   :  { %v880_v6 = vadd.f32 %v1248_v11, %v879_v4 }
 0xe07   :  { %v1110_v48 = vpop.eup %1109 }
 0xe08   :  { %v792_v49 = vadd.f32 1.0, %v1110_v48 }
 0xe0a   :  { %1111 = vrcp.f32 %v792_v49  ;;  %v804_v55 = vand.u32 2147483648, %v792_v49  ;;  %vm798_vm13 = vweird.f32 %v792_v49  ;;  %v802_v56 = vand.u32 2147483647, %v792_v49 }
 0xe0c   :  { %v805_v58 = vor.u32 1.1754944e-38, %v804_v55  ;;  %vm803_vm15 = vcmp.eq.f32.partialorder %v802_v56, 8.507059e+37 }
 0xe10   :  { %v1112_v50 = vpop.eup %1111 }
 0xe11   :  { %v794_v51 = vmul.f32 %v1112_v50, %v792_v49  ;;  %vm799_vm12 = vweird.f32 %v1112_v50 }
 0xe12   :  { %vm800_vm14 = vmor %vm798_vm13, %vm799_vm12 }
 0xe13   :  { %v795_v52 = vsub.f32 1.0, %v794_v51 }
 0xe15   :  { %v796_v53 = vmul.f32 %v1112_v50, %v795_v52 }
 0xe17   :  { %v797_v54 = vadd.f32 %v1112_v50, %v796_v53 }
 0xe19   :  { %v801_v57 = vsel %vm800_vm14, %v1112_v50, %v797_v54 }
 0xe1a   :  { %v806_v60 = vsel %vm803_vm15, %v805_v58, %v801_v57 }
 0xe1b   :  { %v819_v9 = vsub.f32 1.0, %v806_v60  ;;  %v825_v12 = vmul.f32 %v806_v60, %v712_v38  ;;  %v971_v38 = vld [vmem:[%s1527_s5] sm:$0xff] }
 0xe1c   :  { %994 = vmatpush.msra.mxu0 %v971_v38 }
 0xe6f   :  { %v810_v59 = vpop.permute.xlu0 %809 }
 0xe70   :  { %v812_v61 = vmul.f32 %v810_v59, %v806_v60 }
 0xe72   :  { %814 = vrot.lane.b32.xlu1 %v812_v61, %s1124_s12 }
 0xee4   :  { %v815_v62 = vpop.permute.xlu1 %814 }
 0xee5   :  { %v817_v63 = vadd.f32 %v815_v62, %v766_v44 }
 0xee7   :  { %1113 = vtanh.f32 %v817_v63 }
 0xeed   :  { %v1114_v5 = vpop.eup %1113 }
 0xeee   :  { %821 = vrot.lane.b32.xlu2 %v1114_v5, %s1125_s3 }
 0xf48   :  { %v822_v10 = vpop.permute.xlu2 %821 }
 0xf49   :  { %v824_v33 = vmul.f32 %v822_v10, %v819_v9 }
 0xf4b   :  { %v826_v35 = vadd.f32 %v825_v12, %v824_v33 }
 0xf4d   :  { %828 = vrot.lane.b32.xlu0 %v826_v35, %s1125_s3 }
 0xfbf   :  { %v829_v36 = vpop.permute.xlu0 %828 }
 0xfc0   :  { %1055 = vst.msk [vmem:[%s1524_s9 + $0x30] sm:$0xff] %vm79_vm5, %v829_v36  ;;  %1056 = vmatmul.msk.f32.vlgmr.msrb.gmra.mxu0 %vm79_vm5, %v829_v36  ;;  %1060 = vmatmul.msk.f32.vlgmr.msrb.gmra.mxu1 %vm79_vm5, %v829_v36 }
0x103d   :  { %v852_v37 = vpop.f32.mrf.mxu0  ;;  %v899_v0 = vpop.f32.mrf.mxu1 }
0x103e   :  { %v853_v1 = vadd.f32 %v1313_v46, %v852_v37  ;;  %v900_v13 = vadd.f32 %v1241_v8, %v899_v0 }
0x1040   :  { %1057 = vst.msk [vmem:[%s1526_s10 + $0x30] sm:$0xff] %vm79_vm5, %v853_v1  ;;  %923 = vrot.lane.b32.xlu1 %v900_v13, %s1124_s12  ;;  %v902_v14 = vadd.f32 %v900_v13, %v880_v6 }
0x1042   :  { %v1061_v15 = vmul.f32 -1.442695, %v902_v14 }
0x1044   :  { %1115 = vpow2.f32 %v1061_v15 }
0x104a   :  { %v1116_v16 = vpop.eup %1115 }
0x104b   :  { %v906_v17 = vadd.f32 1.0, %v1116_v16 }
0x104d   :  { %1117 = vrcp.f32 %v906_v17  ;;  %v918_v22 = vand.u32 2147483648, %v906_v17  ;;  %vm912_vm1 = vweird.f32 %v906_v17  ;;  %v916_v23 = vand.u32 2147483647, %v906_v17 }
0x104f   :  { %v919_v25 = vor.u32 1.1754944e-38, %v918_v22  ;;  %vm917_vm3 = vcmp.eq.f32.partialorder %v916_v23, 8.507059e+37 }
0x1053   :  { %v1118_v18 = vpop.eup %1117 }
0x1054   :  { %v908_v19 = vmul.f32 %v1118_v18, %v906_v17  ;;  %vm913_vm0 = vweird.f32 %v1118_v18 }
0x1055   :  { %vm914_vm2 = vmor %vm912_vm1, %vm913_vm0 }
0x1056   :  { %v909_v20 = vsub.f32 1.0, %v908_v19 }
0x1058   :  { %v910_v8 = vmul.f32 %v1118_v18, %v909_v20 }
0x105a   :  { %v911_v21 = vadd.f32 %v1118_v18, %v910_v8 }
0x105c   :  { %v915_v24 = vsel %vm914_vm2, %v1118_v18, %v911_v21 }
0x105d   :  { %v920_v26 = vsel %vm917_vm3, %v919_v25, %v915_v24 }
0x105e   :  { %v933_v39 = vsub.f32 1.0, %v920_v26  ;;  %v939_v41 = vmul.f32 %v920_v26, %v826_v35 }
0x10b2   :  { %v924_v11 = vpop.permute.xlu1 %923 }
0x10b3   :  { %v926_v27 = vmul.f32 %v924_v11, %v920_v26 }
0x10b5   :  { %928 = vrot.lane.b32.xlu2 %v926_v27, %s1124_s12 }
0x110f   :  { %v929_v28 = vpop.permute.xlu2 %928 }
0x1110   :  { %v931_v29 = vadd.f32 %v929_v28, %v880_v6 }
0x1112   :  { %1119 = vtanh.f32 %v931_v29 }
0x1118   :  { %v1120_v30 = vpop.eup %1119 }
0x1119   :  { %935 = vrot.lane.b32.xlu0 %v1120_v30, %s1125_s3 }
0x118b   :  { %v936_v40 = vpop.permute.xlu0 %935 }
0x118c   :  { %v938_v2 = vmul.f32 %v936_v40, %v933_v39 }
0x118e   :  { %v940_v3 = vadd.f32 %v939_v41, %v938_v2 }
0x1190   :  { %942 = vrot.lane.b32.xlu1 %v940_v3, %s1125_s3 }
0x1202   :  { %v943_v42 = vpop.permute.xlu1 %942 }
0x1203   :  { %1062 = vst.msk [vmem:[%s1524_s9 + $0x38] sm:$0xff] %vm79_vm5, %v943_v42  ;;  %1063 = vmatmul.msk.f32.vlgmr.msrb.gmra.mxu2 %vm79_vm5, %v943_v42  ;;  %1065 = vmatmul.msk.f32.vlgmr.msra.gmra.mxu0 %vm79_vm5, %v943_v42 }
0x1280   :  { %v996_v44 = vpop.f32.mrf.mxu0 }
0x1281   :  { %v997_v45 = vadd.f32 %v1072_v43, %v996_v44 }
0x1283   :  { %1121 = vtanh.f32 %v997_v45 }
0x1286   :  { %v966_v47 = vpop.f32.mrf.mxu2 }
0x1287   :  { %v967_v48 = vadd.f32 %v1313_v46, %v966_v47 }
0x1289   :  { %v1122_v49 = vpop.eup %1121  ;;  %1064 = vst.msk [vmem:[%s1526_s10 + $0x38] sm:$0xff] %vm79_vm5, %v967_v48 }
0x128a   :  { %1000 = vst.msk [vmem:[%s1529_s11] sm:$0xff] %vm79_vm5, %v1122_v49 }

</bundles_post_ra>
